<compile_context>
chip_gen: v7x
topology: tpu7x:2x2x1
jax: 0.10.0
libtpu: 0.0.40
codegen_flags: <defaults>
</compile_context>

<pallas_src>
import functools
import math

import jax
import jax.numpy as jnp
from jax.experimental import pallas as pl
from jax.experimental.pallas import tpu as pltpu

# ---------------- small synthetic VideoMAE config ----------------
B = 2            # batch of videos
T = 4            # num_frames (stand-in for 16)
C = 3
IMG = 16         # stand-in for 224
TUBELET = 2
PATCH = 8
N_TOK = (T // TUBELET) * (IMG // PATCH) * (IMG // PATCH)   # 2*2*2 = 8 tokens
HIDDEN = 32
HEADS = 2
HEAD_DIM = HIDDEN // HEADS
MLP = 64
LAYERS = 2
NUM_LABELS = 16  # stand-in for the 400 kinetics labels of the pretrained head
NUM_CLASSES = 8  # linear_head output
LN_EPS = 1e-12   # VideoMAEConfig.layer_norm_eps
PATCH_K = C * TUBELET * PATCH * PATCH   # im2col feature width (384)

HEAD_PAD = 128                      # per-head lane-aligned padded width
QKV_W = 3 * HEADS * HEAD_PAD        # fused QKV width (768)
ATTN_W = HEADS * HEAD_PAD           # padded attention-output width (256)
OUT_PAD = 128                       # lane-dense padded logits width

MXU_DTYPE = jnp.bfloat16            # MXU operand dtype (f32 accumulation everywhere)


# ---------------- in-kernel helper ----------------
def _ln(x, g, b):
    """LayerNorm in f32; g/b broadcast from (1, D)."""
    mu = jnp.mean(x, axis=-1, keepdims=True)
    var = jnp.mean(jnp.square(x - mu), axis=-1, keepdims=True)
    return (x - mu) * jax.lax.rsqrt(var + LN_EPS) * g + b


# ---------------- the single fused kernel ----------------
def _ervmae_kernel(patches_ref, w_eff_ref, posb_ref,
                   qkv_w_ref, qkv_b_ref, proj_w_ref, slab_ref,
                   fc1_w_ref, fc2_w_ref,
                   fcn_g_ref, fcn_b_ref, comb_w_ref, comb_b_ref,
                   out_ref, h_ref):
    """grid=(B, LAYERS); one grid step = one encoder layer for one video.

    h_ref is a VMEM scratch holding this batch's residual stream; it is
    (re)initialised at layer 0 and consumed at layer LAYERS-1, so the hidden
    states never round-trip through HBM.
    """
    layer = pl.program_id(1)

    # ---- layer-0 prologue: fused pixel-normalize + tubelet embed + pos embed ----
    @pl.when(layer == 0)
    def _():
        h_ref[...] = (jnp.dot(patches_ref[...].astype(MXU_DTYPE), w_eff_ref[...],
                              preferred_element_type=jnp.float32)
                      + posb_ref[...])              # posb = pos_embed + folded bias

    h = h_ref[...]                                   # (N_TOK, HIDDEN) f32, VMEM-resident

    # small per-layer vectors packed into one (8, 128) slab -> one DMA per layer
    slab = slab_ref[0]
    ln1_g = slab[0:1, :HIDDEN]
    ln1_b = slab[1:2, :HIDDEN]
    proj_b = slab[2:3, :HIDDEN]
    ln2_g = slab[3:4, :HIDDEN]
    ln2_b = slab[4:5, :HIDDEN]
    fc1_b = slab[5:6, :MLP]
    fc2_b = slab[6:7, :HIDDEN]

    # ---- attention sub-block ----
    hn = _ln(h, ln1_g, ln1_b)
    # Fused QKV projection; weight columns are laid out per head as
    # [q(128-padded) | k(128-padded) | v(128-padded)] so every slice below is
    # 128-lane aligned (no masked selects / XLU shuffles).
    qkv = jnp.dot(hn.astype(MXU_DTYPE), qkv_w_ref[0],
                  preferred_element_type=jnp.float32) + qkv_b_ref[0]   # (N_TOK, QKV_W)
    proj_w = proj_w_ref[0]                                             # (ATTN_W, HIDDEN) bf16

    attn_proj = jnp.zeros((N_TOK, HIDDEN), jnp.float32)
    # TODO(synk): at real VideoMAE-B scale (12 heads, 1568 tokens) replace this
    # static loop with lax.fori_loop / a batched dot_general so live ranges stay
    # bounded; with HEADS=2 and 8 tokens the unrolled form is optimal.
    for hh in range(HEADS):
        base = hh * 3 * HEAD_PAD
        q = qkv[:, base:base + HEAD_PAD]                 # 1/sqrt(head_dim) pre-folded
        k = qkv[:, base + HEAD_PAD:base + 2 * HEAD_PAD]
        v = qkv[:, base + 2 * HEAD_PAD:base + 3 * HEAD_PAD]
        # contraction over the last axis of both operands (padding lanes are zero)
        s = jax.lax.dot_general(q.astype(MXU_DTYPE), k.astype(MXU_DTYPE),
                                (((1,), (1,)), ((), ())),
                                preferred_element_type=jnp.float32)    # (N_TOK, N_TOK)
        s = s - jnp.max(s, axis=-1, keepdims=True)
        p = jnp.exp(s)
        p = p * pl.reciprocal(jnp.sum(p, axis=-1, keepdims=True), approx=True)
        o_h = jnp.dot(p.astype(MXU_DTYPE), v.astype(MXU_DTYPE),
                      preferred_element_type=jnp.float32)              # (N_TOK, HEAD_PAD)
        # accumulate straight into the output projection (no concat relayouts)
        attn_proj = attn_proj + jnp.dot(
            o_h.astype(MXU_DTYPE), proj_w[hh * HEAD_PAD:(hh + 1) * HEAD_PAD, :],
            preferred_element_type=jnp.float32)
    h = h + attn_proj + proj_b

    # ---- MLP sub-block ----
    hn2 = _ln(h, ln2_g, ln2_b)
    m = jnp.dot(hn2.astype(MXU_DTYPE), fc1_w_ref[0],
                preferred_element_type=jnp.float32) + fc1_b
    # TODO(synk): HF VideoMAE uses exact (erf) GELU; tanh approximation kept for
    # guaranteed Mosaic lowering.
    m = jax.nn.gelu(m, approximate=True)
    h = h + jnp.dot(m.astype(MXU_DTYPE), fc2_w_ref[0],
                    preferred_element_type=jnp.float32) + fc2_b
    h_ref[...] = h

    # ---- last-layer epilogue: mean pool + fc_norm + fused classifier/linear_head ----
    @pl.when(layer == LAYERS - 1)
    def _():
        pooled = jnp.mean(h, axis=0, keepdims=True)                    # (1, HIDDEN)
        y = _ln(pooled, fcn_g_ref[...], fcn_b_ref[...])
        # cls_w @ head_w pre-folded; Dropout(p=0.1) is identity at inference.
        logits = jnp.dot(y.astype(MXU_DTYPE), comb_w_ref[...],
                         preferred_element_type=jnp.float32) + comb_b_ref[...]  # (1, OUT_PAD)
        # lane-dense (8,128) unmasked store; wrapper keeps row 0, cols :NUM_CLASSES
        out_ref[...] = jnp.broadcast_to(logits, (N_TOK, OUT_PAD))


def ervmae_pallas(patches, ops):
    per_layer3 = lambda shape: pl.BlockSpec((1,) + shape, lambda b, l: (l, 0, 0))
    invariant = lambda shape: pl.BlockSpec(shape, lambda b, l: (0,) * len(shape))

    in_specs = [
        pl.BlockSpec((N_TOK, PATCH_K), lambda b, l: (b, 0)),   # patches (per batch)
        invariant((PATCH_K, HIDDEN)),                          # w_eff (normalize folded)
        invariant((N_TOK, HIDDEN)),                            # pos_embed + patch bias
        per_layer3((HIDDEN, QKV_W)),                           # fused padded QKV weights
        per_layer3((1, QKV_W)),                                # fused padded QKV bias
        per_layer3((ATTN_W, HIDDEN)),                          # padded output projection
        per_layer3((8, 128)),                                  # packed LN/bias slab
        per_layer3((HIDDEN, MLP)),                             # fc1
        per_layer3((MLP, HIDDEN)),                             # fc2
        invariant((1, HIDDEN)),                                # fc_norm gamma
        invariant((1, HIDDEN)),                                # fc_norm beta
        invariant((HIDDEN, OUT_PAD)),                          # cls_w @ head_w (padded)
        invariant((1, OUT_PAD)),                               # folded head bias (padded)
    ]
    out = pl.pallas_call(
        _ervmae_kernel,
        grid=(B, LAYERS),
        in_specs=in_specs,
        out_specs=pl.BlockSpec((N_TOK, OUT_PAD), lambda b, l: (b, 0)),
        out_shape=jax.ShapeDtypeStruct((B * N_TOK, OUT_PAD), jnp.float32),
        scratch_shapes=[pltpu.VMEM((N_TOK, HIDDEN), jnp.float32)],   # residual stream
        compiler_params=pltpu.CompilerParams(
            dimension_semantics=("parallel", "arbitrary"),           # batch || layers seq
            vmem_limit_bytes=32 * 1024 * 1024),
    )(patches, *ops)
    return out.reshape(B, N_TOK, OUT_PAD)[:, 0, :NUM_CLASSES]


# ---------------- glue: im2col for the tubelet (Conv3d) embedding ----------------
def tubelet_patches(x):
    # x: (B, T, C, H, W) -> (B*N_TOK, C*TUBELET*PATCH*PATCH), matching
    # Conv3d(weight (HIDDEN, C, t, p, p), stride=kernel) followed by flatten(2).T.
    # TODO(synk): im2col gather kept in plain JAX; at real scale fold it into the
    # kernel via a BlockSpec index_map gather.
    x = jnp.transpose(x, (0, 2, 1, 3, 4))  # (B, C, T, H, W)
    b_, c_, t_, h_, w_ = x.shape
    x = x.reshape(b_, c_, t_ // TUBELET, TUBELET, h_ // PATCH, PATCH, w_ // PATCH, PATCH)
    x = jnp.transpose(x, (0, 2, 4, 6, 1, 3, 5, 7))   # (B, T', H', W', C, t, p, p)
    return x.reshape(b_ * N_TOK, c_ * TUBELET * PATCH * PATCH)


def sincos_pos_embed(n, d):
    # VideoMAE fixed sinusoid position table.
    pos = jnp.arange(n, dtype=jnp.float32)[:, None]
    i = jnp.arange(d, dtype=jnp.float32)[None, :]
    angle = pos / jnp.power(10000.0, 2.0 * jnp.floor(i / 2.0) / d)
    return jnp.where(jnp.arange(d)[None, :] % 2 == 0, jnp.sin(angle), jnp.cos(angle))


# ---------------- deterministic parameter init (natural / unfolded layout) ----------------
def init_params(key):
    keys = iter(jax.random.split(key, 16))

    def nrm(shape, scale=0.02):
        return jax.random.normal(next(keys), shape, jnp.float32) * scale

    enc = {
        "ln1_g": jnp.ones((LAYERS, HIDDEN), jnp.float32),
        "ln1_b": jnp.zeros((LAYERS, HIDDEN), jnp.float32),
        "q_w": nrm((LAYERS, HIDDEN, HIDDEN)),
        "q_b": jnp.zeros((LAYERS, HIDDEN), jnp.float32),
        "k_w": nrm((LAYERS, HIDDEN, HIDDEN)),
        "k_b": jnp.zeros((LAYERS, HIDDEN), jnp.float32),   # HF VideoMAE: k has no bias
        "v_w": nrm((LAYERS, HIDDEN, HIDDEN)),
        "v_b": jnp.zeros((LAYERS, HIDDEN), jnp.float32),
        "proj_w": nrm((LAYERS, HIDDEN, HIDDEN)),
        "proj_b": jnp.zeros((LAYERS, HIDDEN), jnp.float32),
        "ln2_g": jnp.ones((LAYERS, HIDDEN), jnp.float32),
        "ln2_b": jnp.zeros((LAYERS, HIDDEN), jnp.float32),
        "fc1_w": nrm((LAYERS, HIDDEN, MLP)),
        "fc1_b": jnp.zeros((LAYERS, MLP), jnp.float32),
        "fc2_w": nrm((LAYERS, MLP, HIDDEN)),
        "fc2_b": jnp.zeros((LAYERS, HIDDEN), jnp.float32),
    }
    return {
        "patch_w": nrm((PATCH_K, HIDDEN)),
        "patch_b": jnp.zeros((HIDDEN,), jnp.float32),
        "pos_embed": sincos_pos_embed(N_TOK, HIDDEN),
        "enc": enc,
        "fc_norm_g": jnp.ones((HIDDEN,), jnp.float32),
        "fc_norm_b": jnp.zeros((HIDDEN,), jnp.float32),
        "cls_w": nrm((HIDDEN, NUM_LABELS)),
        "cls_b": jnp.zeros((NUM_LABELS,), jnp.float32),
        "head_w": nrm((NUM_LABELS, NUM_CLASSES)),
        "head_b": jnp.zeros((NUM_CLASSES,), jnp.float32),
    }


# ---------------- weight folding / packing for the kernel ----------------
def prepare_operands(params):
    # ImageNet per-channel normalize folded into the (linear) tubelet embedding.
    # TODO(synk): the processor's bilinear resize to 224x224 is omitted at synthetic scale.
    mean = jnp.array([0.485, 0.456, 0.406], jnp.float32)
    std = jnp.array([0.229, 0.224, 0.225], jnp.float32)
    col_ch = jnp.repeat(jnp.arange(C), TUBELET * PATCH * PATCH)   # channel of each im2col col
    inv_std = (1.0 / std)[col_ch][:, None]
    shift = (mean / std)[col_ch][:, None]
    w_eff = (params["patch_w"] * inv_std).astype(MXU_DTYPE)
    b_eff = params["patch_b"] - jnp.sum(shift * params["patch_w"], axis=0)
    posb = params["pos_embed"] + b_eff[None, :]                   # pos embed + folded bias

    enc = params["enc"]
    scale = 1.0 / math.sqrt(HEAD_DIM)

    def pad_heads_w(w):   # (L, HIDDEN, HEADS*HEAD_DIM) -> (L, HIDDEN, HEADS, HEAD_PAD)
        w = w.reshape(LAYERS, HIDDEN, HEADS, HEAD_DIM)
        return jnp.pad(w, ((0, 0), (0, 0), (0, 0), (0, HEAD_PAD - HEAD_DIM)))

    def pad_heads_b(b):   # (L, HEADS*HEAD_DIM) -> (L, HEADS, HEAD_PAD)
        b = b.reshape(LAYERS, HEADS, HEAD_DIM)
        return jnp.pad(b, ((0, 0), (0, 0), (0, HEAD_PAD - HEAD_DIM)))

    # lane-aligned per-head [q|k|v] layout; 1/sqrt(head_dim) folded into Q.
    qkv_w = jnp.stack([pad_heads_w(enc["q_w"] * scale),
                       pad_heads_w(enc["k_w"]),
                       pad_heads_w(enc["v_w"])], axis=3)          # (L, H, HEADS, 3, HEAD_PAD)
    qkv_w = qkv_w.reshape(LAYERS, HIDDEN, QKV_W).astype(MXU_DTYPE)
    qkv_b = jnp.stack([pad_heads_b(enc["q_b"] * scale),
                       pad_heads_b(enc["k_b"]),
                       pad_heads_b(enc["v_b"])], axis=2)          # (L, HEADS, 3, HEAD_PAD)
    qkv_b = qkv_b.reshape(LAYERS, 1, QKV_W)

    proj_w = enc["proj_w"].reshape(LAYERS, HEADS, HEAD_DIM, HIDDEN)
    proj_w = jnp.pad(proj_w, ((0, 0), (0, 0), (0, HEAD_PAD - HEAD_DIM), (0, 0)))
    proj_w = proj_w.reshape(LAYERS, ATTN_W, HIDDEN).astype(MXU_DTYPE)

    def row(v, width):    # (L, width) -> (L, 1, 128)
        return jnp.pad(v, ((0, 0), (0, 128 - width)))[:, None, :]
    slab = jnp.concatenate([
        row(enc["ln1_g"], HIDDEN), row(enc["ln1_b"], HIDDEN),
        row(enc["proj_b"], HIDDEN),
        row(enc["ln2_g"], HIDDEN), row(enc["ln2_b"], HIDDEN),
        row(enc["fc1_b"], MLP), row(enc["fc2_b"], HIDDEN),
        row(jnp.zeros((LAYERS, HIDDEN), jnp.float32), HIDDEN)], axis=1)   # (L, 8, 128)

    fc1_w = enc["fc1_w"].astype(MXU_DTYPE)
    fc2_w = enc["fc2_w"].astype(MXU_DTYPE)

    # classifier @ linear_head pre-folded (exact: composition of linear maps);
    # padded to 128 lanes so the only HBM output is a lane-dense slab.
    comb_w = params["cls_w"] @ params["head_w"]                        # (HIDDEN, NUM_CLASSES)
    comb_b = params["cls_b"] @ params["head_w"] + params["head_b"]     # (NUM_CLASSES,)
    comb_w = jnp.pad(comb_w, ((0, 0), (0, OUT_PAD - NUM_CLASSES))).astype(MXU_DTYPE)
    comb_b = jnp.pad(comb_b, (0, OUT_PAD - NUM_CLASSES))[None, :]

    fcn_g = params["fc_norm_g"][None, :]
    fcn_b = params["fc_norm_b"][None, :]

    return (w_eff, posb, qkv_w, qkv_b, proj_w, slab,
            fc1_w, fc2_w, fcn_g, fcn_b, comb_w, comb_b)


# ---------------- forward pass (ERVideoMAE.forward semantics) ----------------
def er_videomae_forward(x, params):
    # AutoImageProcessor: rescale + ImageNet normalize (normalize folded into the
    # embedding weights); VideoMAE encoder; mean-pool + fc_norm + classifier;
    # linear_head (Dropout identity at inference + Linear). All in one pallas_call.
    ops = prepare_operands(params)
    patches = tubelet_patches(x)                  # (B*N_TOK, PATCH_K)
    return ervmae_pallas(patches, ops)            # (B, NUM_CLASSES)


if __name__ == "__main__":
    key = jax.random.PRNGKey(0)
    k_x, k_p = jax.random.split(key)
    # synthetic video already rescaled to [0, 1] (as the processor's rescale step would produce)
    x = jax.random.uniform(k_x, (B, T, C, IMG, IMG), dtype=jnp.float32)
    params = init_params(k_p)

    out = jax.jit(er_videomae_forward)(x, params)
    out = jax.block_until_ready(out)
    assert out.shape == (B, NUM_CLASSES), out.shape
    assert jnp.all(jnp.isfinite(out))
    print("KERNEL_OK")
</pallas_src>

<mosaic_0001>
module attributes {stable_mosaic.version = 11 : i64} {
  func.func @_ervmae_kernel(%arg0: i32, %arg1: i32, %arg2: memref<8x384xf32, #tpu.memory_space<vmem>>, %arg3: memref<384x32xbf16, #tpu.memory_space<vmem>>, %arg4: memref<8x32xf32, #tpu.memory_space<vmem>>, %arg5: memref<1x32x768xbf16, #tpu.memory_space<vmem>>, %arg6: memref<1x1x768xf32, #tpu.memory_space<vmem>>, %arg7: memref<1x256x32xbf16, #tpu.memory_space<vmem>>, %arg8: memref<1x8x128xf32, #tpu.memory_space<vmem>>, %arg9: memref<1x32x64xbf16, #tpu.memory_space<vmem>>, %arg10: memref<1x64x32xbf16, #tpu.memory_space<vmem>>, %arg11: memref<1x32xf32, #tpu.memory_space<vmem>>, %arg12: memref<1x32xf32, #tpu.memory_space<vmem>>, %arg13: memref<32x128xbf16, #tpu.memory_space<vmem>>, %arg14: memref<1x128xf32, #tpu.memory_space<vmem>>, %arg15: memref<8x128xf32, #tpu.memory_space<vmem>>, %arg16: memref<8x32xf32, #tpu.memory_space<vmem>>) attributes {dimension_semantics = [#tpu.dimension_semantics<parallel>, #tpu.dimension_semantics<arbitrary>], iteration_bounds = array<i64: 2, 2>, scalar_prefetch = 0 : i64, scratch_operands = 1 : i64, tpu.core_type = #tpu.core_type<tc>, window_params = [{transform_indices = @transform_0, window_bounds = array<i64: 8, 384>}, {pipeline_mode = #tpu.pipeline_mode<synchronous>, transform_indices = @transform_1, window_bounds = array<i64: 384, 32>}, {pipeline_mode = #tpu.pipeline_mode<synchronous>, transform_indices = @transform_2, window_bounds = array<i64: 8, 32>}, {transform_indices = @transform_3, window_bounds = array<i64: 1, 32, 768>}, {transform_indices = @transform_4, window_bounds = array<i64: 1, 1, 768>}, {transform_indices = @transform_5, window_bounds = array<i64: 1, 256, 32>}, {transform_indices = @transform_6, window_bounds = array<i64: 1, 8, 128>}, {transform_indices = @transform_7, window_bounds = array<i64: 1, 32, 64>}, {transform_indices = @transform_8, window_bounds = array<i64: 1, 64, 32>}, {pipeline_mode = #tpu.pipeline_mode<synchronous>, transform_indices = @transform_9, window_bounds = array<i64: 1, 32>}, {pipeline_mode = #tpu.pipeline_mode<synchronous>, transform_indices = @transform_10, window_bounds = array<i64: 1, 32>}, {pipeline_mode = #tpu.pipeline_mode<synchronous>, transform_indices = @transform_11, window_bounds = array<i64: 32, 128>}, {pipeline_mode = #tpu.pipeline_mode<synchronous>, transform_indices = @transform_12, window_bounds = array<i64: 1, 128>}, {transform_indices = @transform_13, window_bounds = array<i64: 8, 128>}]} {
    %c0_i32 = arith.constant 0 : i32
    %0 = arith.cmpi eq, %arg1, %c0_i32 : i32
    %1 = arith.extui %0 : i1 to i32
    %c0_i32_0 = arith.constant 0 : i32
    %2 = arith.cmpi ne, %1, %c0_i32_0 : i32
    scf.if %2 {
      %c0_50 = arith.constant 0 : index
      %c0_51 = arith.constant 0 : index
      %147 = vector.load %arg2[%c0_50, %c0_51] : memref<8x384xf32, #tpu.memory_space<vmem>>, vector<8x384xf32>
      %148 = arith.truncf %147 : vector<8x384xf32> to vector<8x384xbf16>
      %c0_52 = arith.constant 0 : index
      %c0_53 = arith.constant 0 : index
      %149 = vector.load %arg3[%c0_52, %c0_53] : memref<384x32xbf16, #tpu.memory_space<vmem>>, vector<384x32xbf16>
      %cst_54 = arith.constant dense<0.000000e+00> : vector<8x32xf32>
      %150 = tpu.matmul %148, %149, %cst_54 {dimension_numbers = #tpu.dot_dimension_numbers<[1], [0], [0], [1], [0, 0, 1, 1], [], []>} : vector<8x384xbf16>, vector<384x32xbf16>, vector<8x32xf32> -> vector<8x32xf32>
      %c0_55 = arith.constant 0 : index
      %c0_56 = arith.constant 0 : index
      %151 = vector.load %arg4[%c0_55, %c0_56] : memref<8x32xf32, #tpu.memory_space<vmem>>, vector<8x32xf32>
      %152 = arith.addf %150, %151 : vector<8x32xf32>
      %c0_57 = arith.constant 0 : index
      %c0_58 = arith.constant 0 : index
      %153 = vector.load %arg16[%c0_57, %c0_58] : memref<8x32xf32, #tpu.memory_space<vmem>>, vector<8x32xf32>
      tpu.vector_store %arg16[%c0_57, %c0_58], %152 {strides = array<i32>} : memref<8x32xf32, #tpu.memory_space<vmem>>, vector<8x32xf32>,
    } else {
    }
    %c0 = arith.constant 0 : index
    %c0_1 = arith.constant 0 : index
    %3 = vector.load %arg16[%c0, %c0_1] : memref<8x32xf32, #tpu.memory_space<vmem>>, vector<8x32xf32>
    %c0_2 = arith.constant 0 : index
    %c0_3 = arith.constant 0 : index
    %c0_4 = arith.constant 0 : index
    %4 = vector.load %arg8[%c0_2, %c0_3, %c0_4] : memref<1x8x128xf32, #tpu.memory_space<vmem>>, vector<1x8x128xf32>
    %5 = vector.shape_cast %4 : vector<1x8x128xf32> to vector<8x128xf32>
    %6 = vector.extract_strided_slice %5 {offsets = [0, 0], sizes = [1, 32], strides = [1, 1]} : vector<8x128xf32> to vector<1x32xf32>
    %7 = vector.extract_strided_slice %5 {offsets = [1, 0], sizes = [1, 32], strides = [1, 1]} : vector<8x128xf32> to vector<1x32xf32>
    %8 = vector.extract_strided_slice %5 {offsets = [2, 0], sizes = [1, 32], strides = [1, 1]} : vector<8x128xf32> to vector<1x32xf32>
    %9 = vector.extract_strided_slice %5 {offsets = [3, 0], sizes = [1, 32], strides = [1, 1]} : vector<8x128xf32> to vector<1x32xf32>
    %10 = vector.extract_strided_slice %5 {offsets = [4, 0], sizes = [1, 32], strides = [1, 1]} : vector<8x128xf32> to vector<1x32xf32>
    %11 = vector.extract_strided_slice %5 {offsets = [5, 0], sizes = [1, 64], strides = [1, 1]} : vector<8x128xf32> to vector<1x64xf32>
    %12 = vector.extract_strided_slice %5 {offsets = [6, 0], sizes = [1, 32], strides = [1, 1]} : vector<8x128xf32> to vector<1x32xf32>
    %cst = arith.constant dense<0.000000e+00> : vector<8xf32>
    %13 = vector.multi_reduction <add>, %3, %cst [1] : vector<8x32xf32> to vector<8xf32>
    %14 = vector.shape_cast %13 : vector<8xf32> to vector<8x1xf32>
    %cst_5 = arith.constant 3.200000e+01 : f32
    %15 = vector.broadcast %cst_5 : f32 to vector<8x1xf32>
    %16 = arith.divf %14, %15 : vector<8x1xf32>
    %17 = vector.broadcast %16 : vector<8x1xf32> to vector<8x32xf32>
    %18 = arith.subf %3, %17 : vector<8x32xf32>
    %19 = arith.mulf %18, %18 : vector<8x32xf32>
    %cst_6 = arith.constant dense<0.000000e+00> : vector<8xf32>
    %20 = vector.multi_reduction <add>, %19, %cst_6 [1] : vector<8x32xf32> to vector<8xf32>
    %21 = vector.shape_cast %20 : vector<8xf32> to vector<8x1xf32>
    %cst_7 = arith.constant 3.200000e+01 : f32
    %22 = vector.broadcast %cst_7 : f32 to vector<8x1xf32>
    %23 = arith.divf %21, %22 : vector<8x1xf32>
    %24 = vector.broadcast %16 : vector<8x1xf32> to vector<8x32xf32>
    %25 = arith.subf %3, %24 : vector<8x32xf32>
    %cst_8 = arith.constant 9.99999996E-13 : f32
    %26 = vector.broadcast %cst_8 : f32 to vector<8x1xf32>
    %27 = arith.addf %23, %26 : vector<8x1xf32>
    %28 = math.rsqrt %27 : vector<8x1xf32>
    %29 = vector.broadcast %28 : vector<8x1xf32> to vector<8x32xf32>
    %30 = arith.mulf %25, %29 : vector<8x32xf32>
    %31 = vector.broadcast %6 : vector<1x32xf32> to vector<8x32xf32>
    %32 = arith.mulf %30, %31 : vector<8x32xf32>
    %33 = vector.broadcast %7 : vector<1x32xf32> to vector<8x32xf32>
    %34 = arith.addf %32, %33 : vector<8x32xf32>
    %35 = arith.truncf %34 : vector<8x32xf32> to vector<8x32xbf16>
    %c0_9 = arith.constant 0 : index
    %c0_10 = arith.constant 0 : index
    %c0_11 = arith.constant 0 : index
    %36 = vector.load %arg5[%c0_9, %c0_10, %c0_11] : memref<1x32x768xbf16, #tpu.memory_space<vmem>>, vector<1x32x768xbf16>
    %37 = vector.shape_cast %36 : vector<1x32x768xbf16> to vector<32x768xbf16>
    %cst_12 = arith.constant dense<0.000000e+00> : vector<8x768xf32>
    %38 = tpu.matmul %35, %37, %cst_12 {dimension_numbers = #tpu.dot_dimension_numbers<[1], [0], [0], [1], [0, 0, 1, 1], [], []>} : vector<8x32xbf16>, vector<32x768xbf16>, vector<8x768xf32> -> vector<8x768xf32>
    %c0_13 = arith.constant 0 : index
    %c0_14 = arith.constant 0 : index
    %c0_15 = arith.constant 0 : index
    %39 = vector.load %arg6[%c0_13, %c0_14, %c0_15] : memref<1x1x768xf32, #tpu.memory_space<vmem>>, vector<1x1x768xf32>
    %40 = vector.shape_cast %39 : vector<1x1x768xf32> to vector<1x768xf32>
    %41 = vector.broadcast %40 : vector<1x768xf32> to vector<8x768xf32>
    %42 = arith.addf %38, %41 : vector<8x768xf32>
    %c0_16 = arith.constant 0 : index
    %c0_17 = arith.constant 0 : index
    %c0_18 = arith.constant 0 : index
    %43 = vector.load %arg7[%c0_16, %c0_17, %c0_18] : memref<1x256x32xbf16, #tpu.memory_space<vmem>>, vector<1x256x32xbf16>
    %44 = vector.shape_cast %43 : vector<1x256x32xbf16> to vector<256x32xbf16>
    %cst_19 = arith.constant 0.000000e+00 : f32
    %45 = vector.broadcast %cst_19 : f32 to vector<8x32xf32>
    %46 = vector.extract_strided_slice %42 {offsets = [0, 0], sizes = [8, 128], strides = [1, 1]} : vector<8x768xf32> to vector<8x128xf32>
    %47 = vector.extract_strided_slice %42 {offsets = [0, 128], sizes = [8, 128], strides = [1, 1]} : vector<8x768xf32> to vector<8x128xf32>
    %48 = vector.extract_strided_slice %42 {offsets = [0, 256], sizes = [8, 128], strides = [1, 1]} : vector<8x768xf32> to vector<8x128xf32>
    %49 = arith.truncf %46 : vector<8x128xf32> to vector<8x128xbf16>
    %50 = arith.truncf %47 : vector<8x128xf32> to vector<8x128xbf16>
    %cst_20 = arith.constant dense<0.000000e+00> : vector<8x8xf32>
    %51 = tpu.matmul %49, %50, %cst_20 {dimension_numbers = #tpu.dot_dimension_numbers<[1], [1], [0], [0], [0, 0, 1, 0], [], []>} : vector<8x128xbf16>, vector<8x128xbf16>, vector<8x8xf32> -> vector<8x8xf32>
    %cst_21 = arith.constant dense<0xFF800000> : vector<8xf32>
    %52 = vector.multi_reduction <maximumf>, %51, %cst_21 [1] : vector<8x8xf32> to vector<8xf32>
    %53 = vector.shape_cast %52 : vector<8xf32> to vector<8x1xf32>
    %54 = vector.broadcast %53 : vector<8x1xf32> to vector<8x8xf32>
    %55 = arith.subf %51, %54 : vector<8x8xf32>
    %56 = math.exp %55 : vector<8x8xf32>
    %cst_22 = arith.constant dense<0.000000e+00> : vector<8xf32>
    %57 = vector.multi_reduction <add>, %56, %cst_22 [1] : vector<8x8xf32> to vector<8xf32>
    %58 = vector.shape_cast %57 : vector<8xf32> to vector<8x1xf32>
    %59 = tpu.reciprocal %58 {approx = true} : vector<8x1xf32> -> vector<8x1xf32>
    %60 = vector.broadcast %59 : vector<8x1xf32> to vector<8x8xf32>
    %61 = arith.mulf %56, %60 : vector<8x8xf32>
    %62 = arith.truncf %61 : vector<8x8xf32> to vector<8x8xbf16>
    %63 = arith.truncf %48 : vector<8x128xf32> to vector<8x128xbf16>
    %cst_23 = arith.constant dense<0.000000e+00> : vector<8x128xf32>
    %64 = tpu.matmul %62, %63, %cst_23 {dimension_numbers = #tpu.dot_dimension_numbers<[1], [0], [0], [1], [0, 0, 1, 1], [], []>} : vector<8x8xbf16>, vector<8x128xbf16>, vector<8x128xf32> -> vector<8x128xf32>
    %65 = arith.truncf %64 : vector<8x128xf32> to vector<8x128xbf16>
    %66 = vector.extract_strided_slice %44 {offsets = [0, 0], sizes = [128, 32], strides = [1, 1]} : vector<256x32xbf16> to vector<128x32xbf16>
    %cst_24 = arith.constant dense<0.000000e+00> : vector<8x32xf32>
    %67 = tpu.matmul %65, %66, %cst_24 {dimension_numbers = #tpu.dot_dimension_numbers<[1], [0], [0], [1], [0, 0, 1, 1], [], []>} : vector<8x128xbf16>, vector<128x32xbf16>, vector<8x32xf32> -> vector<8x32xf32>
    %68 = arith.addf %45, %67 : vector<8x32xf32>
    %69 = vector.extract_strided_slice %42 {offsets = [0, 384], sizes = [8, 128], strides = [1, 1]} : vector<8x768xf32> to vector<8x128xf32>
    %70 = vector.extract_strided_slice %42 {offsets = [0, 512], sizes = [8, 128], strides = [1, 1]} : vector<8x768xf32> to vector<8x128xf32>
    %71 = vector.extract_strided_slice %42 {offsets = [0, 640], sizes = [8, 128], strides = [1, 1]} : vector<8x768xf32> to vector<8x128xf32>
    %72 = arith.truncf %69 : vector<8x128xf32> to vector<8x128xbf16>
    %73 = arith.truncf %70 : vector<8x128xf32> to vector<8x128xbf16>
    %cst_25 = arith.constant dense<0.000000e+00> : vector<8x8xf32>
    %74 = tpu.matmul %72, %73, %cst_25 {dimension_numbers = #tpu.dot_dimension_numbers<[1], [1], [0], [0], [0, 0, 1, 0], [], []>} : vector<8x128xbf16>, vector<8x128xbf16>, vector<8x8xf32> -> vector<8x8xf32>
    %cst_26 = arith.constant dense<0xFF800000> : vector<8xf32>
    %75 = vector.multi_reduction <maximumf>, %74, %cst_26 [1] : vector<8x8xf32> to vector<8xf32>
    %76 = vector.shape_cast %75 : vector<8xf32> to vector<8x1xf32>
    %77 = vector.broadcast %76 : vector<8x1xf32> to vector<8x8xf32>
    %78 = arith.subf %74, %77 : vector<8x8xf32>
    %79 = math.exp %78 : vector<8x8xf32>
    %cst_27 = arith.constant dense<0.000000e+00> : vector<8xf32>
    %80 = vector.multi_reduction <add>, %79, %cst_27 [1] : vector<8x8xf32> to vector<8xf32>
    %81 = vector.shape_cast %80 : vector<8xf32> to vector<8x1xf32>
    %82 = tpu.reciprocal %81 {approx = true} : vector<8x1xf32> -> vector<8x1xf32>
    %83 = vector.broadcast %82 : vector<8x1xf32> to vector<8x8xf32>
    %84 = arith.mulf %79, %83 : vector<8x8xf32>
    %85 = arith.truncf %84 : vector<8x8xf32> to vector<8x8xbf16>
    %86 = arith.truncf %71 : vector<8x128xf32> to vector<8x128xbf16>
    %cst_28 = arith.constant dense<0.000000e+00> : vector<8x128xf32>
    %87 = tpu.matmul %85, %86, %cst_28 {dimension_numbers = #tpu.dot_dimension_numbers<[1], [0], [0], [1], [0, 0, 1, 1], [], []>} : vector<8x8xbf16>, vector<8x128xbf16>, vector<8x128xf32> -> vector<8x128xf32>
    %88 = arith.truncf %87 : vector<8x128xf32> to vector<8x128xbf16>
    %89 = vector.extract_strided_slice %44 {offsets = [128, 0], sizes = [128, 32], strides = [1, 1]} : vector<256x32xbf16> to vector<128x32xbf16>
    %cst_29 = arith.constant dense<0.000000e+00> : vector<8x32xf32>
    %90 = tpu.matmul %88, %89, %cst_29 {dimension_numbers = #tpu.dot_dimension_numbers<[1], [0], [0], [1], [0, 0, 1, 1], [], []>} : vector<8x128xbf16>, vector<128x32xbf16>, vector<8x32xf32> -> vector<8x32xf32>
    %91 = arith.addf %68, %90 : vector<8x32xf32>
    %92 = arith.addf %3, %91 : vector<8x32xf32>
    %93 = vector.broadcast %8 : vector<1x32xf32> to vector<8x32xf32>
    %94 = arith.addf %92, %93 : vector<8x32xf32>
    %cst_30 = arith.constant dense<0.000000e+00> : vector<8xf32>
    %95 = vector.multi_reduction <add>, %94, %cst_30 [1] : vector<8x32xf32> to vector<8xf32>
    %96 = vector.shape_cast %95 : vector<8xf32> to vector<8x1xf32>
    %cst_31 = arith.constant 3.200000e+01 : f32
    %97 = vector.broadcast %cst_31 : f32 to vector<8x1xf32>
    %98 = arith.divf %96, %97 : vector<8x1xf32>
    %99 = vector.broadcast %98 : vector<8x1xf32> to vector<8x32xf32>
    %100 = arith.subf %94, %99 : vector<8x32xf32>
    %101 = arith.mulf %100, %100 : vector<8x32xf32>
    %cst_32 = arith.constant dense<0.000000e+00> : vector<8xf32>
    %102 = vector.multi_reduction <add>, %101, %cst_32 [1] : vector<8x32xf32> to vector<8xf32>
    %103 = vector.shape_cast %102 : vector<8xf32> to vector<8x1xf32>
    %cst_33 = arith.constant 3.200000e+01 : f32
    %104 = vector.broadcast %cst_33 : f32 to vector<8x1xf32>
    %105 = arith.divf %103, %104 : vector<8x1xf32>
    %106 = vector.broadcast %98 : vector<8x1xf32> to vector<8x32xf32>
    %107 = arith.subf %94, %106 : vector<8x32xf32>
    %cst_34 = arith.constant 9.99999996E-13 : f32
    %108 = vector.broadcast %cst_34 : f32 to vector<8x1xf32>
    %109 = arith.addf %105, %108 : vector<8x1xf32>
    %110 = math.rsqrt %109 : vector<8x1xf32>
    %111 = vector.broadcast %110 : vector<8x1xf32> to vector<8x32xf32>
    %112 = arith.mulf %107, %111 : vector<8x32xf32>
    %113 = vector.broadcast %9 : vector<1x32xf32> to vector<8x32xf32>
    %114 = arith.mulf %112, %113 : vector<8x32xf32>
    %115 = vector.broadcast %10 : vector<1x32xf32> to vector<8x32xf32>
    %116 = arith.addf %114, %115 : vector<8x32xf32>
    %117 = arith.truncf %116 : vector<8x32xf32> to vector<8x32xbf16>
    %c0_35 = arith.constant 0 : index
    %c0_36 = arith.constant 0 : index
    %c0_37 = arith.constant 0 : index
    %118 = vector.load %arg9[%c0_35, %c0_36, %c0_37] : memref<1x32x64xbf16, #tpu.memory_space<vmem>>, vector<1x32x64xbf16>
    %119 = vector.shape_cast %118 : vector<1x32x64xbf16> to vector<32x64xbf16>
    %cst_38 = arith.constant dense<0.000000e+00> : vector<8x64xf32>
    %120 = tpu.matmul %117, %119, %cst_38 {dimension_numbers = #tpu.dot_dimension_numbers<[1], [0], [0], [1], [0, 0, 1, 1], [], []>} : vector<8x32xbf16>, vector<32x64xbf16>, vector<8x64xf32> -> vector<8x64xf32>
    %121 = vector.broadcast %11 : vector<1x64xf32> to vector<8x64xf32>
    %122 = arith.addf %120, %121 : vector<8x64xf32>
    %123 = arith.mulf %122, %122 : vector<8x64xf32>
    %124 = arith.mulf %122, %123 : vector<8x64xf32>
    %cst_39 = arith.constant 4.471500e-02 : f32
    %125 = vector.broadcast %cst_39 : f32 to vector<8x64xf32>
    %126 = arith.mulf %125, %124 : vector<8x64xf32>
    %127 = arith.addf %122, %126 : vector<8x64xf32>
    %cst_40 = arith.constant 0.797884583 : f32
    %128 = vector.broadcast %cst_40 : f32 to vector<8x64xf32>
    %129 = arith.mulf %128, %127 : vector<8x64xf32>
    %130 = math.tanh %129 : vector<8x64xf32>
    %cst_41 = arith.constant 1.000000e+00 : f32
    %131 = vector.broadcast %cst_41 : f32 to vector<8x64xf32>
    %132 = arith.addf %131, %130 : vector<8x64xf32>
    %cst_42 = arith.constant 5.000000e-01 : f32
    %133 = vector.broadcast %cst_42 : f32 to vector<8x64xf32>
    %134 = arith.mulf %133, %132 : vector<8x64xf32>
    %135 = arith.mulf %122, %134 : vector<8x64xf32>
    %136 = arith.truncf %135 : vector<8x64xf32> to vector<8x64xbf16>
    %c0_43 = arith.constant 0 : index
    %c0_44 = arith.constant 0 : index
    %c0_45 = arith.constant 0 : index
    %137 = vector.load %arg10[%c0_43, %c0_44, %c0_45] : memref<1x64x32xbf16, #tpu.memory_space<vmem>>, vector<1x64x32xbf16>
    %138 = vector.shape_cast %137 : vector<1x64x32xbf16> to vector<64x32xbf16>
    %cst_46 = arith.constant dense<0.000000e+00> : vector<8x32xf32>
    %139 = tpu.matmul %136, %138, %cst_46 {dimension_numbers = #tpu.dot_dimension_numbers<[1], [0], [0], [1], [0, 0, 1, 1], [], []>} : vector<8x64xbf16>, vector<64x32xbf16>, vector<8x32xf32> -> vector<8x32xf32>
    %140 = arith.addf %94, %139 : vector<8x32xf32>
    %141 = vector.broadcast %12 : vector<1x32xf32> to vector<8x32xf32>
    %142 = arith.addf %140, %141 : vector<8x32xf32>
    %c0_47 = arith.constant 0 : index
    %c0_48 = arith.constant 0 : index
    %143 = vector.load %arg16[%c0_47, %c0_48] : memref<8x32xf32, #tpu.memory_space<vmem>>, vector<8x32xf32>
    tpu.vector_store %arg16[%c0_47, %c0_48], %142 {strides = array<i32>} : memref<8x32xf32, #tpu.memory_space<vmem>>, vector<8x32xf32>,
    %c1_i32 = arith.constant 1 : i32
    %144 = arith.cmpi eq, %arg1, %c1_i32 : i32
    %145 = arith.extui %144 : i1 to i32
    %c0_i32_49 = arith.constant 0 : i32
    %146 = arith.cmpi ne, %145, %c0_i32_49 : i32
    scf.if %146 {
      %cst_50 = arith.constant dense<0.000000e+00> : vector<32xf32>
      %147 = vector.multi_reduction <add>, %142, %cst_50 [0] : vector<8x32xf32> to vector<32xf32>
      %148 = vector.shape_cast %147 : vector<32xf32> to vector<1x32xf32>
      %cst_51 = arith.constant 8.000000e+00 : f32
      %149 = vector.broadcast %cst_51 : f32 to vector<1x32xf32>
      %150 = arith.divf %148, %149 : vector<1x32xf32>
      %c0_52 = arith.constant 0 : index
      %c0_53 = arith.constant 0 : index
      %151 = vector.load %arg11[%c0_52, %c0_53] : memref<1x32xf32, #tpu.memory_space<vmem>>, vector<1x32xf32>
      %c0_54 = arith.constant 0 : index
      %c0_55 = arith.constant 0 : index
      %152 = vector.load %arg12[%c0_54, %c0_55] : memref<1x32xf32, #tpu.memory_space<vmem>>, vector<1x32xf32>
      %cst_56 = arith.constant dense<0.000000e+00> : vector<1xf32>
      %153 = vector.multi_reduction <add>, %150, %cst_56 [1] : vector<1x32xf32> to vector<1xf32>
      %154 = vector.shape_cast %153 : vector<1xf32> to vector<1x1xf32>
      %cst_57 = arith.constant 3.200000e+01 : f32
      %155 = vector.broadcast %cst_57 : f32 to vector<1x1xf32>
      %156 = arith.divf %154, %155 : vector<1x1xf32>
      %157 = vector.broadcast %156 : vector<1x1xf32> to vector<1x32xf32>
      %158 = arith.subf %150, %157 : vector<1x32xf32>
      %159 = arith.mulf %158, %158 : vector<1x32xf32>
      %cst_58 = arith.constant dense<0.000000e+00> : vector<1xf32>
      %160 = vector.multi_reduction <add>, %159, %cst_58 [1] : vector<1x32xf32> to vector<1xf32>
      %161 = vector.shape_cast %160 : vector<1xf32> to vector<1x1xf32>
      %cst_59 = arith.constant 3.200000e+01 : f32
      %162 = vector.broadcast %cst_59 : f32 to vector<1x1xf32>
      %163 = arith.divf %161, %162 : vector<1x1xf32>
      %164 = vector.broadcast %156 : vector<1x1xf32> to vector<1x32xf32>
      %165 = arith.subf %150, %164 : vector<1x32xf32>
      %cst_60 = arith.constant 9.99999996E-13 : f32
      %166 = vector.broadcast %cst_60 : f32 to vector<1x1xf32>
      %167 = arith.addf %163, %166 : vector<1x1xf32>
      %168 = math.rsqrt %167 : vector<1x1xf32>
      %169 = vector.broadcast %168 : vector<1x1xf32> to vector<1x32xf32>
      %170 = arith.mulf %165, %169 : vector<1x32xf32>
      %171 = arith.mulf %170, %151 : vector<1x32xf32>
      %172 = arith.addf %171, %152 : vector<1x32xf32>
      %173 = arith.truncf %172 : vector<1x32xf32> to vector<1x32xbf16>
      %c0_61 = arith.constant 0 : index
      %c0_62 = arith.constant 0 : index
      %174 = vector.load %arg13[%c0_61, %c0_62] : memref<32x128xbf16, #tpu.memory_space<vmem>>, vector<32x128xbf16>
      %cst_63 = arith.constant dense<0.000000e+00> : vector<1x128xf32>
      %175 = tpu.matmul %173, %174, %cst_63 {dimension_numbers = #tpu.dot_dimension_numbers<[1], [0], [0], [1], [0, 0, 1, 1], [], []>} : vector<1x32xbf16>, vector<32x128xbf16>, vector<1x128xf32> -> vector<1x128xf32>
      %c0_64 = arith.constant 0 : index
      %c0_65 = arith.constant 0 : index
      %176 = vector.load %arg14[%c0_64, %c0_65] : memref<1x128xf32, #tpu.memory_space<vmem>>, vector<1x128xf32>
      %177 = arith.addf %175, %176 : vector<1x128xf32>
      %178 = vector.shape_cast %177 : vector<1x128xf32> to vector<1x128xf32>
      %179 = vector.broadcast %178 : vector<1x128xf32> to vector<8x128xf32>
      %c0_66 = arith.constant 0 : index
      %c0_67 = arith.constant 0 : index
      %180 = vector.load %arg15[%c0_66, %c0_67] : memref<8x128xf32, #tpu.memory_space<vmem>>, vector<8x128xf32>
      tpu.vector_store %arg15[%c0_66, %c0_67], %179 {strides = array<i32>} : memref<8x128xf32, #tpu.memory_space<vmem>>, vector<8x128xf32>,
    } else {
    }
    return
  }
  func.func @transform_0(%arg0: i32, %arg1: i32) -> (i32, i32) {
    %c0_i32 = arith.constant 0 : i32
    %c0_i32_0 = arith.constant 0 : i32
    return %arg0, %c0_i32 : i32, i32
  }
  func.func @transform_1(%arg0: i32, %arg1: i32) -> (i32, i32) {
    %c0_i32 = arith.constant 0 : i32
    %c0_i32_0 = arith.constant 0 : i32
    %c0_i32_1 = arith.constant 0 : i32
    return %c0_i32, %c0_i32_0 : i32, i32
  }
  func.func @transform_2(%arg0: i32, %arg1: i32) -> (i32, i32) {
    %c0_i32 = arith.constant 0 : i32
    %c0_i32_0 = arith.constant 0 : i32
    %c0_i32_1 = arith.constant 0 : i32
    return %c0_i32, %c0_i32_0 : i32, i32
  }
  func.func @transform_3(%arg0: i32, %arg1: i32) -> (i32, i32, i32) {
    %c0_i32 = arith.constant 0 : i32
    %c0_i32_0 = arith.constant 0 : i32
    %c0_i32_1 = arith.constant 0 : i32
    return %arg1, %c0_i32, %c0_i32_0 : i32, i32, i32
  }
  func.func @transform_4(%arg0: i32, %arg1: i32) -> (i32, i32, i32) {
    %c0_i32 = arith.constant 0 : i32
    %c0_i32_0 = arith.constant 0 : i32
    %c0_i32_1 = arith.constant 0 : i32
    return %arg1, %c0_i32, %c0_i32_0 : i32, i32, i32
  }
  func.func @transform_5(%arg0: i32, %arg1: i32) -> (i32, i32, i32) {
    %c0_i32 = arith.constant 0 : i32
    %c0_i32_0 = arith.constant 0 : i32
    %c0_i32_1 = arith.constant 0 : i32
    return %arg1, %c0_i32, %c0_i32_0 : i32, i32, i32
  }
  func.func @transform_6(%arg0: i32, %arg1: i32) -> (i32, i32, i32) {
    %c0_i32 = arith.constant 0 : i32
    %c0_i32_0 = arith.constant 0 : i32
    %c0_i32_1 = arith.constant 0 : i32
    return %arg1, %c0_i32, %c0_i32_0 : i32, i32, i32
  }
  func.func @transform_7(%arg0: i32, %arg1: i32) -> (i32, i32, i32) {
    %c0_i32 = arith.constant 0 : i32
    %c0_i32_0 = arith.constant 0 : i32
    %c0_i32_1 = arith.constant 0 : i32
    return %arg1, %c0_i32, %c0_i32_0 : i32, i32, i32
  }
  func.func @transform_8(%arg0: i32, %arg1: i32) -> (i32, i32, i32) {
    %c0_i32 = arith.constant 0 : i32
    %c0_i32_0 = arith.constant 0 : i32
    %c0_i32_1 = arith.constant 0 : i32
    return %arg1, %c0_i32, %c0_i32_0 : i32, i32, i32
  }
  func.func @transform_9(%arg0: i32, %arg1: i32) -> (i32, i32) {
    %c0_i32 = arith.constant 0 : i32
    %c0_i32_0 = arith.constant 0 : i32
    %c0_i32_1 = arith.constant 0 : i32
    return %c0_i32, %c0_i32_0 : i32, i32
  }
  func.func @transform_10(%arg0: i32, %arg1: i32) -> (i32, i32) {
    %c0_i32 = arith.constant 0 : i32
    %c0_i32_0 = arith.constant 0 : i32
    %c0_i32_1 = arith.constant 0 : i32
    return %c0_i32, %c0_i32_0 : i32, i32
  }
  func.func @transform_11(%arg0: i32, %arg1: i32) -> (i32, i32) {
    %c0_i32 = arith.constant 0 : i32
    %c0_i32_0 = arith.constant 0 : i32
    %c0_i32_1 = arith.constant 0 : i32
    return %c0_i32, %c0_i32_0 : i32, i32
  }
  func.func @transform_12(%arg0: i32, %arg1: i32) -> (i32, i32) {
    %c0_i32 = arith.constant 0 : i32
    %c0_i32_0 = arith.constant 0 : i32
    %c0_i32_1 = arith.constant 0 : i32
    return %c0_i32, %c0_i32_0 : i32, i32
  }
  func.func @transform_13(%arg0: i32, %arg1: i32) -> (i32, i32) {
    %c0_i32 = arith.constant 0 : i32
    %c0_i32_0 = arith.constant 0 : i32
    return %arg0, %c0_i32 : i32, i32
  }
}

</mosaic_0001>

<bundles_post_ra>
// kernel: sub.1
= control target key start
LH: loop header
LB: loop body
LE: loop exit
PB: predicated region body
PF: predicated region fallthrough
CT: control target
= control target key end

     0   :  { %s34_s0 = inlined_call_operand.vmem [shape: f32[32], index: 0, kind: input, shape index: {}]   ;;  %s35_s1 = inlined_call_operand.vmem [shape: f32[32], index: 1, kind: input, shape index: {}]   ;;  %s36_s2 = inlined_call_operand.vmem [shape: f32[32], index: 2, kind: output, shape index: {}]  }
   0x1   :  { %v3_v0 = vld [vmem:[%s34_s0] sm:$0x1] }
   0x2   :  { %v4_v1 = vld [vmem:[%s35_s1] sm:$0x1] }
   0x3   :  { %v7_v2 = vsub.f32 %v3_v0, %v4_v1 }
   0x5   :  { %9 = vst [vmem:[%s36_s2] sm:$0x1] %v7_v2 }

// kernel: er_videomae_forward.1
= control target key start
LH: loop header
LB: loop body
LE: loop exit
PB: predicated region body
PF: predicated region fallthrough
CT: control target
= control target key end

     0   :  { %s2460_s25 = smov 0   ;;  %s2462_s26 = smov 0   ;;  %s2791_s0 = inlined_call_operand.vmem [shape: f32[16,384], index: 0, kind: input, shape index: {}]   ;;  %s2792_s1 = inlined_call_operand.vmem [shape: bf16[384,32], index: 1, kind: input, shape index: {}]   ;;  %s2793_s2 = inlined_call_operand.vmem [shape: f32[8,32], index: 2, kind: input, shape index: {}]   ;;  %s2794_s3 = inlined_call_operand.vmem [shape: bf16[2,32,768], index: 3, kind: input, shape index: {}]   ;;  %s2795_s4 = inlined_call_operand.vmem [shape: f32[2,1,768], index: 4, kind: input, shape index: {}]   ;;  %s2796_s5 = inlined_call_operand.vmem [shape: bf16[2,256,32], index: 5, kind: input, shape index: {}]   ;;  %s2797_s6 = inlined_call_operand.vmem [shape: f32[2,8,128], index: 6, kind: input, shape index: {}]   ;;  %s2798_s7 = inlined_call_operand.vmem [shape: bf16[2,32,64], index: 7, kind: input, shape index: {}]   ;;  %s2799_s8 = inlined_call_operand.vmem [shape: bf16[2,64,32], index: 8, kind: input, shape index: {}]   ;;  %s2800_s9 = inlined_call_operand.vmem [shape: f32[1,32], index: 9, kind: input, shape index: {}]   ;;  %s2801_s10 = inlined_call_operand.vmem [shape: f32[1,32], index: 10, kind: input, shape index: {}]   ;;  %s2802_s11 = inlined_call_operand.vmem [shape: bf16[32,128], index: 11, kind: input, shape index: {}]   ;;  %s2803_s12 = inlined_call_operand.vmem [shape: f32[1,128], index: 12, kind: input, shape index: {}]   ;;  %s2804_s13 = inlined_call_operand.vmem [shape: f32[16,128], index: 13, kind: output, shape index: {}]  }
   0x1   :  { %2808 = sst [smem:[#allocation8_spill]] %s2791_s0  ;;  %s2464_s27 = smov 0  }
   0x2   :  { %2809 = sst [smem:[#allocation9_spill]] %s2794_s3  ;;  %s2466_s28 = smov 0  }
   0x3   :  { %2810 = sst [smem:[#allocation10_spill]] %s2800_s9  ;;  %s2468_s29 = smov 0  }
   0x4   :  { %2811 = sst [smem:[#allocation11_spill]] %s2801_s10 }
   0x5   :  { %2812 = sst [smem:[#allocation12_spill]] %s2803_s12 }
   0x6 LB: > { %2813 = sst [smem:[#allocation3_spill]] %s2373_s27  ;;  %s32_s30 = sadd.s32 1, %s2373_s27  ;;  %s2381_s29 = sphi %s2468_s29, %s23_s29   ;;  %s2377_s28 = sphi %s2466_s28, %s2827_s28   ;;  %s2373_s27 = sphi %s2464_s27, %s2826_s27   ;;  %s2369_s26 = sphi %s2462_s26, %s2825_s26   ;;  %s2365_s25 = sphi %s2460_s25, %s2824_s25  }
   0x7   : > { %2814 = sst [smem:[#allocation4_spill]] %s2377_s28  ;;  %s35_s14 = sadd.s32 1, %s2377_s28 }
   0x8   : > { %2815 = sst [smem:[#allocation5_spill]] %s2381_s29  ;;  %p33_p0 = scmp.ge.s32.totalorder %s32_s30, 2 }
   0x9   : > { %p1945_p1 = scmp.ge.s32.totalorder %s2381_s29, 1  ;;  %p457_p2 = scmp.lt.s32.totalorder %s2381_s29, 5 }
   0xa   : > { %s2829_s30 = smov (%p33_p0, %s32_s30), 0  ;;  %s2831_s14 = smov (!%p33_p0, %s35_s14), %s2377_s28 }
   0xb   : > { %2816 = sst [smem:[#allocation6_spill]] %s2829_s30  ;;  %p458_p3 = pnand %p1945_p1, %p457_p2 }
   0xc   : > { %p37_p4 = scmp.ge.s32.totalorder %s2831_s14, 2  ;;  %p528_p5 = scmp.lt.s32.totalorder (!%p458_p3), %s2369_s26, 1 }
   0xd   : > { %461 = sbr.rel (%p458_p3) target bundleno = 3109 (0xc25), region = 72  ;;  %p533_p6 = scmp.lt.s32.totalorder (!%p458_p3), %s2365_s25, 1 }
   0xe   : > { %s2833_s14 = smov (%p37_p4, %s2831_s14), 0  ;;  %s2818_s0 = sld [smem:[#allocation8_spill]] (!%p458_p3) }
   0xf   : > { %2817 = sst [smem:[#allocation7_spill]] %s2833_s14  ;;  %s2819_s3 = sld [smem:[#allocation9_spill]] (!%p458_p3) }
  0x10   : > { %p1956_p7 = scmp.ne.s32.totalorder (!%p458_p3), %s2365_s25, 0 }
  0x14   : > { %s2835_s26 = smov (!%p528_p5, %s2369_s26), 1  ;;  %v2261_v0 = vld [vmem:[%s2792_s1 + $0x40] sm:$0xff] (!%p1956_p7)   ;;  %v2383_v2 = vmov (!%p1956_p7), 0.0   ;;  %vm2384_vm0 = vmmov (!%p1956_p7), 0   ;;  %v2264_v4 = vld [vmem:[%s2792_s1 + $0x48] sm:$0xff] (!%p1956_p7)   ;;  %v2267_v7 = vld [vmem:[%s2792_s1 + $0x50] sm:$0xff] (!%p1956_p7)  }
  0x15   : > { %s534_s15 = scalar_select %p533_p6, %s2365_s25, 1 }
  0x16   : > { %s2211_s16 = smul.u32 24, %s2835_s26  ;;  %s1955_s17 = sshll.u32 %s2835_s26, 3  ;;  %v2262_v1 = vld [vmem:[%s2792_s1] sm:$0xff] (!%p1956_p7)   ;;  %2099 = vmatprep.subr.bf16.mxu1 (!%p1956_p7), %v2383_v2  ;;  %2031 = vmatprep.subr.bf16.mxu0 (!%p1956_p7), %v2261_v0  ;;  %v2265_v5 = vld [vmem:[%s2792_s1 + $0x8] sm:$0xff] (!%p1956_p7)   ;;  %v2268_v8 = vld [vmem:[%s2792_s1 + $0x10] sm:$0xff] (!%p1956_p7)   ;;  %vm849_vm1 = vcmask (!%p1956_p7), 261120  }
  0x17   : > { %s2212_s18 = smul.u32 96, %s534_s15  ;;  %s2028_s19 = sshll.u32 %s534_s15, 7  ;;  %v2263_v3 = vld [vmem:[%s2792_s1 + $0x80] sm:$0xff] (!%p1956_p7)   ;;  %2115 = vmatprep.mubr.msk.bf16.mxu1 (!%p1956_p7), %vm2384_vm0, %v2383_v2  ;;  %2032 = vmatpush3.bf16.msra.mxu0 (!%p1956_p7), %v2262_v1  ;;  %v2266_v6 = vld [vmem:[%s2792_s1 + $0x88] sm:$0xff] (!%p1956_p7)   ;;  %v2269_v9 = vld [vmem:[%s2792_s1 + $0x90] sm:$0xff] (!%p1956_p7)  }
  0x18   : > { %s2497_s22 = scalar_lea.vmem %s2818_s0, %s2211_s16  ;;  %s2213_s23 = smul.u32 6, %s534_s15  ;;  %2100 = vmatpush3.bf16.msra.mxu1 (!%p1956_p7), %v2263_v3  ;;  %2033 = vmatprep.subr.bf16.mxu0 (!%p1956_p7), %v2264_v4  ;;  %v2270_v10 = vld [vmem:[%s2792_s1 + $0x58] sm:$0xff] (!%p1956_p7)   ;;  %v2273_v13 = vld [vmem:[%s2792_s1 + $0x60] sm:$0xff] (!%p1956_p7)   ;;  %v2276_v16 = vld [vmem:[%s2792_s1 + $0x68] sm:$0xff] (!%p1956_p7)  }
  0x19   : > { %s2502_s14 = scalar_lea.vmem %s2819_s3, %s2212_s18  ;;  %s2507_s29 = scalar_lea.vmem %s2796_s5, %s2028_s19  ;;  %2101 = vmatprep.subr.bf16.mxu1 (!%p1956_p7), %v2383_v2  ;;  %v2271_v11 = vld [vmem:[%s2792_s1 + $0x18] sm:$0xff] (!%p1956_p7)   ;;  %v2274_v14 = vld [vmem:[%s2792_s1 + $0x20] sm:$0xff] (!%p1956_p7)   ;;  %v2277_v17 = vld [vmem:[%s2792_s1 + $0x28] sm:$0xff] (!%p1956_p7)  }
  0x1a   : > { %s2512_s10 = scalar_lea.vmem %s2795_s4, %s2213_s23  ;;  %s1950_s9 = sshll.u32 %s534_s15, 3  ;;  %v2272_v12 = vld [vmem:[%s2792_s1 + $0x98] sm:$0xff] (!%p1956_p7)   ;;  %v2275_v15 = vld [vmem:[%s2792_s1 + $0xa0] sm:$0xff] (!%p1956_p7)   ;;  %v2278_v18 = vld [vmem:[%s2792_s1 + $0xa8] sm:$0xff] (!%p1956_p7)  }
  0x1b   : > { %s2517_s21 = scalar_lea.vmem %s2797_s6, %s1950_s9  ;;  %s2029_s0 = sshll.u32 %s534_s15, 4  ;;  %2034 = vmatpush3.bf16.msra.mxu0 (!%p1956_p7), %v2265_v5  ;;  %v2279_v19 = vld [vmem:[%s2792_s1 + $0x70] sm:$0xff] (!%p1956_p7)   ;;  %v571_v21 = vld [vmem:[%s2497_s22 + $0x8] sm:$0xff] (!%p1956_p7)  ;;  %v2282_v23 = vld [vmem:[%s2792_s1 + $0x78] sm:$0xff] (!%p1956_p7)  }
  0x1c   : > { %s2522_s24 = scalar_lea.vmem %s2798_s7, %s2029_s0  ;;  %s2030_s27 = sshll.u32 %s534_s15, 5  ;;  %2102 = vmatpush3.bf16.msra.mxu1 (!%p1956_p7), %v2266_v6  ;;  %2035 = vmatprep.subr.bf16.mxu0 (!%p1956_p7), %v2267_v7  ;;  %v2280_v20 = vld [vmem:[%s2792_s1 + $0x30] sm:$0xff] (!%p1956_p7)   ;;  %v574_v24 = vpack.c.bf16 (!%p1956_p7), %v571_v21, %v571_v21  ;;  %v2283_v25 = vld [vmem:[%s2792_s1 + $0x38] sm:$0xff] (!%p1956_p7)   ;;  %v570_v26 = vld [vmem:[%s2497_s22] sm:$0xff] (!%p1956_p7) }
  0x1d   : > { %s2527_s3 = scalar_lea.vmem %s2799_s8, %s2030_s27  ;;  %s2532_s26 = scalar_lea.vmem %s2804_s13, %s1955_s17  ;;  %2103 = vmatprep.subr.bf16.mxu1 (!%p1956_p7), %v2383_v2  ;;  %v2281_v22 = vld [vmem:[%s2792_s1 + $0xb0] sm:$0xff] (!%p1956_p7)   ;;  %v2284_v27 = vld [vmem:[%s2792_s1 + $0xb8] sm:$0xff] (!%p1956_p7)   ;;  %v573_v29 = vpack.c.bf16 (!%p1956_p7), %v570_v26, %v570_v26  ;;  %v624_v33 = vld [vmem:[%s2793_s2] sm:$0xff] (!%p1956_p7) }
  0x1e   : > { %569 = sbr.rel (%p1956_p7) target bundleno = 274 (0x112), region = 76  ;;  %801 = vmatprep.mubr.bf16.mxu0 (!%p1956_p7), %v574_v24  ;;  %v572_v28 = vld [vmem:[%s2497_s22 + $0x10] sm:$0xff] (!%p1956_p7) }
  0x1f   : > { %2036 = vmatpush3.bf16.msra.mxu0 (!%p1956_p7), %v2268_v8  ;;  %v575_v30 = vpack.c.bf16 (!%p1956_p7), %v572_v28, %v572_v28 }
  0x20   : > { %2104 = vmatpush3.bf16.msra.mxu1 (!%p1956_p7), %v2269_v9  ;;  %2037 = vmatprep.subr.bf16.mxu0 (!%p1956_p7), %v2270_v10 }
  0x21   : > { %2105 = vmatprep.subr.bf16.mxu1 (!%p1956_p7), %v2383_v2 }
  0x23   : > { %2038 = vmatpush3.bf16.msra.mxu0 (!%p1956_p7), %v2271_v11 }
  0x24   : > { %2106 = vmatpush3.bf16.msra.mxu1 (!%p1956_p7), %v2272_v12  ;;  %2039 = vmatprep.subr.bf16.mxu0 (!%p1956_p7), %v2273_v13 }
  0x25   : > { %2107 = vmatprep.subr.bf16.mxu1 %v2383_v2 }
  0x27   : > { %2040 = vmatpush3.bf16.msra.mxu0 %v2274_v14 }
  0x28   : > { %2108 = vmatpush3.bf16.msra.mxu1 %v2275_v15  ;;  %2041 = vmatprep.subr.bf16.mxu0 %v2276_v16 }
  0x29   : > { %2109 = vmatprep.subr.bf16.mxu1 %v2383_v2 }
  0x2b   : > { %2042 = vmatpush3.bf16.msra.mxu0 %v2277_v17 }
  0x2c   : > { %2110 = vmatpush3.bf16.msra.mxu1 %v2278_v18  ;;  %2043 = vmatprep.subr.bf16.mxu0 %v2279_v19 }
  0x2d   : > { %2111 = vmatprep.subr.bf16.mxu1 %v2383_v2 }
  0x2f   : > { %2044 = vmatpush3.bf16.msra.mxu0 %v2280_v20 }
  0x30   : > { %2112 = vmatpush3.bf16.msra.mxu1 %v2281_v22  ;;  %2045 = vmatprep.subr.bf16.mxu0 %v2282_v23 }
  0x31   : > { %2113 = vmatprep.subr.bf16.mxu1 %v2383_v2 }
  0x33   : > { %2046 = vmatpush3.bf16.msra.mxu0 %v2283_v25 }
  0x34   : > { %2114 = vmatpush3.bf16.msra.mxu1 %v2284_v27 }
  0x36   : > { %802 = vmatmul.mubr.bf16.vlgmr.msra.gmra.mrb[0].mxu0 %v573_v29 }
  0x37   : > { %2116 = vmatmul.mubr.bf16.vlgmr.msra.gmra.mrb[0].mxu1 %v575_v30 }
 0x109   : > { %v2047_v31 = vpop.f32.mrb[0].mxu0 }
 0x10a   : > { %v2048_v32 = vpop.f32.mrb[1].mxu0  ;;  %v843_v34 = vpop.f32.mrb[0].mxu1 }
 0x10b   : > { %v2049_v35 = vadd.f32 %v2048_v32, %v2047_v31  ;;  %v2050_v36 = vpop.f32.mrb[2].mxu0  ;;  %v2117_v37 = vpop.f32.mrb[1].mxu1 }
 0x10c   : > { %v2051_v38 = vpop.f32.mrb[3].mxu0  ;;  %v846_v39 = vpop.f32.mrb[2].mxu1 }
 0x10d   : > { %v804_v40 = vadd.f32 %v2049_v35, %v624_v33  ;;  %v2118_v41 = vpop.f32.mrb[3].mxu1 }
 0x10f   : > { %v844_v42 = vadd.f32 %v843_v34, %v804_v40 }
 0x111   : > { %850 = vst.msk [vmem:[#allocation2] sm:$0xff] %vm849_vm1, %v844_v42 }
 0x112 PF: > { %vm853_vm2 = vcmask 261120   ;;  %v2285_v50 = vld [vmem:[%s2502_s14 + $0x4] ss:$24 sps:$4 sm:$0xff]   ;;  %v2287_v51 = vld [vmem:[%s2502_s14 + $0x14] ss:$24 sps:$4 sm:$0xff]   ;;  %v2385_v58 = vmov 0   ;;  %v868_v62 = vlaneseq }
 0x113   : > { %v2289_v52 = vld [vmem:[%s2502_s14] ss:$24 sps:$4 sm:$0xff]   ;;  %v2290_v53 = vld [vmem:[%s2502_s14 + $0x10] ss:$24 sps:$4 sm:$0xff]   ;;  %v2291_v54 = vld [vmem:[%s2502_s14 + $0x34] ss:$24 sps:$4 sm:$0xff]   ;;  %986 = vmatprep.subr.bf16.mxu1 %v2285_v50  ;;  %1068 = vmatprep.subr.bf16.mxu0 %v2287_v51 }
 0x114   : > { %v2293_v55 = vld [vmem:[%s2502_s14 + $0x44] ss:$24 sps:$4 sm:$0xff]   ;;  %987 = vmatpush1.bf16.msra.mxu1 %v2289_v52  ;;  %1069 = vmatpush1.bf16.msra.mxu0 %v2290_v53  ;;  %v2295_v56 = vld [vmem:[%s2502_s14 + $0x30] ss:$24 sps:$4 sm:$0xff]   ;;  %v2296_v57 = vld [vmem:[%s2502_s14 + $0x40] ss:$24 sps:$4 sm:$0xff]  }
 0x115   : > { %988 = vmatprep.subr.bf16.mxu1 %v2291_v54  ;;  %1070 = vmatprep.subr.bf16.mxu0 %v2293_v55  ;;  %v2299_v59 = vld [vmem:[%s2502_s14 + $0xc] ss:$24 sps:$4 sm:$0xff]   ;;  %v2628_v0 = vshrl.u32 %v868_v62, 7  ;;  %v2297_v10 = vld [vmem:[%s2502_s14 + $0x8] ss:$24 sps:$4 sm:$0xff]   ;;  %v2386_v14 = vmov 0.0  }
 0x116   : > { %1018 = vmatprep.mubr.bf16.mxu1 %v2385_v58  ;;  %1100 = vmatprep.mubr.bf16.mxu0 %v2385_v58  ;;  %v2634_v2 = vld [vmem:[%s2517_s21] sm:$0xff]  ;;  %v2302_v12 = vld [vmem:[%s2502_s14 + $0x3c] ss:$24 sps:$4 sm:$0xff]   ;;  %v2300_v13 = vld [vmem:[%s2502_s14 + $0x38] ss:$24 sps:$4 sm:$0xff]   ;;  %vm2387_vm3 = vmmov 0  }
 0x117   : > { %v2631_v1 = vsub.s32 0, %v2628_v0  ;;  %v875_v3 = vsub.s32 1, %v2628_v0  ;;  %v891_v15 = vld [vmem:[%s2512_s10] sm:$0x3f]  ;;  %v915_v16 = vsub.s32 5, %v2628_v0  ;;  %v911_v21 = vsub.s32 4, %v2628_v0 }
 0x118   : > { %v2613_v43 = vld [vmem:[#allocation2] sm:$0xff]  ;;  %989 = vmatpush1.bf16.msra.mxu1 %v2295_v56  ;;  %1071 = vmatpush1.bf16.msra.mxu0 %v2296_v57  ;;  %v903_v26 = vsub.s32 2, %v2628_v0  ;;  %vm1200_vm4 = vcmask 1043456   ;;  %v907_v38 = vsub.s32 3, %v2628_v0  ;;  %vm1183_vm5 = vcmask 64512   ;;  %p2022_p8 = scmp.ne.s32.totalorder %s2365_s25, 1 }
 0x119   : > { %v854_v44 = vsel %vm853_vm2, %v2613_v43, 0.0  ;;  %1027 = vmatprep.subr.bf16.mxu1 %v2299_v59  ;;  %v871_v4 = vrot.slane %v2634_v2, %v2631_v1  ;;  %v876_v7 = vrot.slane %v2634_v2, %v875_v3  ;;  %2125 = vmatprep.subr.bf16.mxu0 %v2386_v14  ;;  %v896_v17 = vrot.slane %v891_v15, %v2631_v1  ;;  %s2820_s21 = sld [smem:[#allocation10_spill]] (!%p2022_p8)  ;;  %s2821_s23 = sld [smem:[#allocation11_spill]] (!%p2022_p8) }
 0x11a   : > { %855 = vadd.xlane.f32.xlu0 %v854_v44  ;;  %v900_v18 = vrot.slane %v891_v15, %v875_v3  ;;  %v916_v19 = vrot.slane %v891_v15, %v915_v16  ;;  %v912_v33 = vrot.slane %v891_v15, %v911_v21  ;;  %v904_v36 = vrot.slane %v891_v15, %v903_v26  ;;  %s2822_s0 = sld [smem:[#allocation12_spill]] (!%p2022_p8) }
 0x11b   : > { %vm1658_vm6 = vcmask 523264   ;;  %vm2389_vm7 = vmmov (!%p2022_p8), 0  }
 0x1a7   : > { %v856_v45 = vpop.xlane.xlu0 %855 }
 0x1a8   : > { %v858_v46 = vmul.f32 0.03125, %v856_v45 }
 0x1aa   : > { %v859_v47 = vsub.f32 %v2613_v43, %v858_v46 }
 0x1ac   : > { %v860_v48 = vmul.f32 %v859_v47, %v859_v47 }
 0x1ae   : > { %v861_v49 = vsel %vm853_vm2, %v860_v48, 0.0 }
 0x1af   : > { %862 = vadd.xlane.f32.xlu0 %v861_v49 }
 0x23c   : > { %v863_v60 = vpop.xlane.xlu0 %862 }
 0x23d   : > { %v864_v61 = vmul.f32 0.03125, %v863_v60 }
 0x23f   : > { %v865_v63 = vadd.f32 1e-12, %v864_v61 }
 0x241   : > { %2325 = vrsqrt.f32 %v865_v63 }
 0x24b   : > { %v2326_v5 = vpop.eup %2325 }
 0x24c   : > { %v867_v6 = vmul.f32 %v2326_v5, %v859_v47  ;;  %v908_v47 = vrot.slane %v891_v15, %v907_v38  ;;  %v2309_v15 = vld [vmem:[%s2507_s29 + $0x50] sm:$0xff]  }
 0x24e   : > { %v872_v8 = vmul.f32 %v871_v4, %v867_v6 }
 0x250   : > { %v877_v9 = vadd.f32 %v876_v7, %v872_v8 }
 0x252   : > { %v878_v11 = vpack.c.bf16 %v877_v9, %v877_v9 }
 0x254   : > { %1993 = vmatmul.mubr.msk.bf16.vlgmr.msra.gmra.mrb[0].mxu1 %vm853_vm2, %v878_v11  ;;  %1995 = vmatmul.mubr.msk.bf16.vlgmr.msra.gmra.mrb[0].mxu0 %vm853_vm2, %v878_v11 }
 0x255   : > { %1028 = vmatpush1.bf16.msra.mxu1 %v2297_v10  ;;  %1059 = vmatprep.mubr.bf16.mxu1 %v2385_v58 }
 0x256   : > { %1029 = vmatprep.subr.bf16.mxu1 %v2302_v12  ;;  %2127 = vmatprep.mubr.msk.bf16.mxu0 %vm2387_vm3, %v2386_v14  ;;  %v2305_v12 = vld [vmem:[%s2507_s29 + $0x40] sm:$0xff]  }
 0x259   : > { %1030 = vmatpush1.bf16.msra.mxu1 %v2300_v13  ;;  %v2307_v13 = vld [vmem:[%s2507_s29 + $0x48] sm:$0xff]  }
 0x25a   : > { %2119 = vmatprep.subr.bf16.mxu1 %v2386_v14 }
 0x25c   : > { %1994 = vmatmul.mubr.msk.bf16.vlgmr.msra.gmra.mrb[4].mxu1 %vm853_vm2, %v878_v11 }
 0x25d   : > { %2121 = vmatprep.mubr.msk.bf16.mxu1 %vm2387_vm3, %v2386_v14 }
 0x327   : > { %v1020_v20 = vpop.f32.mrb[0].mxu1  ;;  %v1102_v22 = vpop.f32.mrb[0].mxu0 }
 0x328   : > { %v1021_v23 = vadd.f32 %v1020_v20, %v896_v17  ;;  %v1022_v24 = vpop.f32.mrb[1].mxu1  ;;  %v1104_v25 = vpop.f32.mrb[1].mxu0  ;;  %v1103_v39 = vadd.f32 %v1102_v22, %v912_v33  ;;  %v2311_v17 = vld [vmem:[%s2507_s29 + $0x58] sm:$0xff]   ;;  %v2310_v33 = vld [vmem:[%s2507_s29 + $0x20] sm:$0xff]  }
 0x329   : > { %v1023_v27 = vadd.f32 %v1022_v24, %v900_v18  ;;  %v1105_v28 = vadd.f32 %v1104_v25, %v916_v19  ;;  %v1024_v29 = vpop.f32.mrb[2].mxu1  ;;  %v1106_v30 = vpop.f32.mrb[2].mxu0  ;;  %v2313_v18 = vld [vmem:[%s2507_s29 + $0x60] sm:$0xff]  }
 0x32a   : > { %v1025_v31 = vpop.f32.mrb[3].mxu1  ;;  %v1107_v32 = vpop.f32.mrb[3].mxu0  ;;  %v1141_v45 = vpack.c.bf16 %v1021_v23, %v1021_v23  ;;  %v1246_v49 = vpack.c.bf16 %v1103_v39, %v1103_v39  ;;  %v2304_v30 = vld [vmem:[%s2507_s29 + $0x8] sm:$0xff]   ;;  %v2317_v39 = vld [vmem:[%s2507_s29 + $0x70] sm:$0xff]  }
 0x32b   : > { %v1142_v34 = vpack.c.bf16 %v1023_v27, %v1023_v27  ;;  %v1299_v35 = vpack.c.bf16 %v1105_v28, %v1105_v28  ;;  %v2303_v28 = vld [vmem:[%s2507_s29] sm:$0xff]   ;;  %v2306_v31 = vld [vmem:[%s2507_s29 + $0x10] sm:$0xff]   ;;  %v2308_v32 = vld [vmem:[%s2507_s29 + $0x18] sm:$0xff]  }
 0x32d   : > { %v2664_v37 = vsel %vm1200_vm4, %v1299_v35, 0  ;;  %2120 = vmatpush3.bf16.xpose.msra.mxu1 %v1142_v34  ;;  %v2312_v34 = vld [vmem:[%s2507_s29 + $0x28] sm:$0xff]   ;;  %v2314_v35 = vld [vmem:[%s2507_s29 + $0x30] sm:$0xff]  }
 0x32e   : > { %2131 = vmatprep.subr.bf16.mxu1 %v2386_v14 }
 0x32f   : > { %v1061_v40 = vpop.f32.mrb[4].mxu1 }
 0x330   : > { %v1062_v41 = vadd.f32 %v1061_v40, %v904_v36  ;;  %v1063_v42 = vpop.f32.mrb[5].mxu1  ;;  %v2315_v36 = vld [vmem:[%s2507_s29 + $0x68] sm:$0xff]   ;;  %v2318_v40 = vld [vmem:[%s2507_s29 + $0x78] sm:$0xff]  }
 0x331   : > { %v1065_v44 = vpop.f32.mrb[6].mxu1  ;;  %v1064_v51 = vadd.f32 %v1063_v42, %v908_v47 }
 0x332   : > { %v1196_v46 = vpack.c.bf16 %v1062_v41, %v1062_v41  ;;  %v1066_v48 = vpop.f32.mrb[7].mxu1 }
 0x333   : > { %v1245_v52 = vpack.c.bf16 %v1064_v51, %v1064_v51 }
 0x334   : > { %v1202_v50 = vsel %vm1200_vm4, %v1196_v46, 0  ;;  %2122 = vmatmul.mubr.bf16.vlgmr.msra.gmra.mrb[8].mxu1 %v1141_v45 }
 0x335   : > { %2126 = vmatpush3.bf16.msra.mxu0 %v1202_v50  ;;  %2132 = vmatpush3.bf16.xpose.msra.mxu1 %v1246_v49 }
 0x336   : > { %2133 = vmatprep.mubr.msk.bf16.mxu1 %vm2387_vm3, %v2386_v14  ;;  %2137 = vmatprep.subr.bf16.mxu0 %v2386_v14 }
 0x337   : > { %2143 = vmatprep.subr.bf16.mxu1 %v2386_v14 }
 0x33c   : > { %2134 = vmatmul.mubr.bf16.vlgmr.msra.gmra.mrb[12].mxu1 %v1245_v52 }
 0x33d   : > { %2159 = vmatprep.mubr.msk.bf16.mxu1 %vm2387_vm3, %v2386_v14  ;;  %2144 = vmatpush3.bf16.msra.mxu1 %v2305_v12  ;;  %v1545_v12 = vrot.slane %v2634_v2, %v907_v38  ;;  %v2323_v38 = vld [vmem:[%s2527_s3 + $0x10] sm:$0xff]  }
 0x33e   : > { %2145 = vmatprep.subr.bf16.mxu1 %v2386_v14 }
 0x341   : > { %2146 = vmatpush3.bf16.msra.mxu1 %v2307_v13 }
 0x342   : > { %2147 = vmatprep.subr.bf16.mxu1 %v2386_v14 }
 0x345   : > { %2148 = vmatpush3.bf16.msra.mxu1 %v2309_v15  ;;  %v1550_v15 = vrot.slane %v2634_v2, %v911_v21  ;;  %v1560_v21 = vrot.slane %v2634_v2, %v915_v16  ;;  %v1705_v16 = vsub.s32 6, %v2628_v0 }
 0x346   : > { %2149 = vmatprep.subr.bf16.mxu1 %v2386_v14 }
 0x349   : > { %2150 = vmatpush3.bf16.msra.mxu1 %v2311_v17 }
 0x34a   : > { %2151 = vmatprep.subr.bf16.mxu1 %v2386_v14 }
 0x34d   : > { %2152 = vmatpush3.bf16.msra.mxu1 %v2313_v18 }
 0x34e   : > { %2153 = vmatprep.subr.bf16.mxu1 %v2386_v14 }
 0x351   : > { %2154 = vmatpush3.bf16.msra.mxu1 %v2315_v36 }
 0x352   : > { %2155 = vmatprep.subr.bf16.mxu1 %v2386_v14 }
 0x355   : > { %2156 = vmatpush3.bf16.msra.mxu1 %v2317_v39 }
 0x356   : > { %2157 = vmatprep.subr.bf16.mxu1 %v2386_v14 }
 0x359   : > { %2158 = vmatpush3.bf16.msra.mxu1 %v2318_v40 }
 0x35a   : > { %2183 = vmatprep.subr.bf16.mxu1 %v2386_v14 }
 0x407   : > { %v1177_v53 = vpop.f32.mrb[8].mxu1 }
 0x408   : > { %v2123_v54 = vpop.f32.mrb[9].mxu1  ;;  %v1184_v55 = vsel %vm1183_vm5, %v1177_v53, -inf }
 0x409   : > { %1185 = vmax.xlane.f32.xlu1 %v1184_v55  ;;  %v1180_v56 = vpop.f32.mrb[10].mxu1 }
 0x40a   : > { %v2124_v57 = vpop.f32.mrb[11].mxu1 }
 0x40f   : > { %v1281_v58 = vpop.f32.mrb[12].mxu1 }
 0x410   : > { %v2135_v59 = vpop.f32.mrb[13].mxu1  ;;  %v1287_v60 = vsel %vm1183_vm5, %v1281_v58, -inf }
 0x411   : > { %1288 = vmax.xlane.f32.xlu1 %v1287_v60  ;;  %v1284_v61 = vpop.f32.mrb[14].mxu1 }
 0x412   : > { %v2136_v62 = vpop.f32.mrb[15].mxu1 }
 0x496   : > { %v1186_v63 = vpop.xlane.xlu1 %1185 }
 0x497   : > { %v1187_v3 = vsub.f32 %v1177_v53, %v1186_v63 }
 0x499   : > { %v1188_v4 = vmul.f32 1.442695, %v1187_v3 }
 0x49b   : > { %2327 = vpow2.f32 %v1188_v4 }
 0x49e   : > { %v1289_v5 = vpop.xlane.xlu1 %1288 }
 0x49f   : > { %v1290_v6 = vsub.f32 %v1281_v58, %v1289_v5  ;;  %v1527_v58 = vrot.slane %v2634_v2, %v903_v26  ;;  %v2320_v26 = vld [vmem:[%s2522_s24 + $0x8] sm:$0xff]  }
 0x4a1   : > { %v1291_v7 = vmul.f32 1.442695, %v1290_v6 }
 0x4a3   : > { %2329 = vpow2.f32 %v1291_v7 }
 0x4a5   : > { %v2328_v8 = vpop.eup %2327 }
 0x4a6   : > { %v1190_v9 = vsel %vm1183_vm5, %v2328_v8, 0.0 }
 0x4a7   : > { %1191 = vadd.xlane.f32.xlu0 %v1190_v9  ;;  %v2319_v9 = vld [vmem:[%s2522_s24] sm:$0xff]  }
 0x4ad   : > { %v2330_v10 = vpop.eup %2329 }
 0x4ae   : > { %v1293_v11 = vsel %vm1183_vm5, %v2330_v10, 0.0 }
 0x4af   : > { %1294 = vadd.xlane.f32.xlu1 %v1293_v11 }
 0x534   : > { %v1192_v19 = vpop.xlane.xlu0 %1191 }
 0x535   : > { %2331 = vrcp.f32 %v1192_v19 }
 0x53c   : > { %v1295_v20 = vpop.xlane.xlu1 %1294 }
 0x53d   : > { %2333 = vrcp.f32 %v1295_v20 }
 0x53f   : > { %v2332_v22 = vpop.eup %2331 }
 0x540   : > { %v1194_v23 = vmul.f32 %v2332_v22, %v2328_v8  ;;  %v2321_v22 = vld [vmem:[%s2527_s3] sm:$0xff]  }
 0x542   : > { %v1195_v24 = vpack.c.bf16 %v1194_v23, %v1194_v23  ;;  %v2322_v23 = vld [vmem:[%s2527_s3 + $0x8] sm:$0xff]  }
 0x544   : > { %2128 = vmatmul.mubr.msk.bf16.vlgmr.msra.gmra.mrb[4].mxu0 %vm1183_vm5, %v1195_v24  ;;  %v2324_v24 = vld [vmem:[%s2527_s3 + $0x18] sm:$0xff]  }
 0x545   : > { %2138 = vmatpush3.bf16.msra.mxu0 %v2664_v37  ;;  %2139 = vmatprep.mubr.msk.bf16.mxu0 %vm2387_vm3, %v2386_v14  ;;  %v2316_v37 = vld [vmem:[%s2507_s29 + $0x38] sm:$0xff]  }
 0x546   : > { %2163 = vmatprep.subr.bf16.mxu0 %v2386_v14 }
 0x547   : > { %v2334_v25 = vpop.eup %2333 }
 0x548   : > { %v1297_v27 = vmul.f32 %v2334_v25, %v2330_v10 }
 0x54a   : > { %v1298_v29 = vpack.c.bf16 %v1297_v27, %v1297_v27 }
 0x54c   : > { %2140 = vmatmul.mubr.msk.bf16.vlgmr.msra.gmra.mrb[8].mxu0 %vm1183_vm5, %v1298_v29 }
 0x54d   : > { %2164 = vmatpush3.bf16.msra.mxu0 %v2303_v28  ;;  %2179 = vmatprep.mubr.msk.bf16.mxu0 %vm2387_vm3, %v2386_v14 }
 0x54e   : > { %2165 = vmatprep.subr.bf16.mxu0 %v2386_v14 }
 0x551   : > { %2166 = vmatpush3.bf16.msra.mxu0 %v2304_v30 }
 0x552   : > { %2167 = vmatprep.subr.bf16.mxu0 %v2386_v14 }
 0x555   : > { %2168 = vmatpush3.bf16.msra.mxu0 %v2306_v31 }
 0x556   : > { %2169 = vmatprep.subr.bf16.mxu0 %v2386_v14 }
 0x559   : > { %2170 = vmatpush3.bf16.msra.mxu0 %v2308_v32 }
 0x55a   : > { %2171 = vmatprep.subr.bf16.mxu0 %v2386_v14 }
 0x55d   : > { %2172 = vmatpush3.bf16.msra.mxu0 %v2310_v33 }
 0x55e   : > { %2173 = vmatprep.subr.bf16.mxu0 %v2386_v14 }
 0x561   : > { %2174 = vmatpush3.bf16.msra.mxu0 %v2312_v34 }
 0x562   : > { %2175 = vmatprep.subr.bf16.mxu0 %v2386_v14 }
 0x565   : > { %2176 = vmatpush3.bf16.msra.mxu0 %v2314_v35 }
 0x566   : > { %2177 = vmatprep.subr.bf16.mxu0 %v2386_v14 }
 0x569   : > { %2178 = vmatpush3.bf16.msra.mxu0 %v2316_v37 }
 0x56a   : > { %2191 = vmatprep.subr.bf16.mxu0 %v2386_v14 }
 0x617   : > { %v1238_v41 = vpop.f32.mrb[4].mxu0 }
 0x618   : > { %v1244_v42 = vpack.c.bf16 %v1238_v41, %v1238_v41  ;;  %v2129_v44 = vpop.f32.mrb[5].mxu0  ;;  %v1706_v41 = vrot.slane %v2634_v2, %v1705_v16 }
 0x619   : > { %v1241_v45 = vpop.f32.mrb[6].mxu0 }
 0x61a   : > { %v2130_v46 = vpop.f32.mrb[7].mxu0  ;;  %2180 = vmatmul.mubr.bf16.vlgmr.msra.gmra.mrb[12].mxu0 %v1244_v42 }
 0x61b   : > { %2199 = vmatprep.mubr.msk.bf16.mxu0 %vm2387_vm3, %v2386_v14  ;;  %2192 = vmatpush3.bf16.msra.mxu0 %v2321_v22 }
 0x61c   : > { %2193 = vmatprep.subr.bf16.mxu0 %v2386_v14 }
 0x61f   : > { %v1340_v47 = vpop.f32.mrb[8].mxu0  ;;  %2194 = vmatpush3.bf16.msra.mxu0 %v2322_v23 }
 0x620   : > { %v1346_v48 = vpack.c.bf16 %v1340_v47, %v1340_v47  ;;  %v2141_v49 = vpop.f32.mrb[9].mxu0  ;;  %2195 = vmatprep.subr.bf16.mxu0 %v2386_v14 }
 0x621   : > { %v1343_v50 = vpop.f32.mrb[10].mxu0 }
 0x622   : > { %v2142_v51 = vpop.f32.mrb[11].mxu0  ;;  %2160 = vmatmul.mubr.bf16.vlgmr.msra.gmra.mrb[16].mxu1 %v1346_v48 }
 0x623   : > { %2187 = vmatprep.mubr.msk.bf16.mxu1 %vm2387_vm3, %v2386_v14  ;;  %2184 = vmatpush3.bf16.msra.mxu1 %v2319_v9  ;;  %v1723_v9 = vld [vmem:[%s2821_s23] sm:$0x1] (!%p2022_p8) }
 0x624   : > { %2185 = vmatprep.subr.bf16.mxu1 %v2386_v14  ;;  %2196 = vmatpush3.bf16.msra.mxu0 %v2323_v38 }
 0x625   : > { %2197 = vmatprep.subr.bf16.mxu0 %v2386_v14 }
 0x627   : > { %2186 = vmatpush3.bf16.msra.mxu1 %v2320_v26 }
 0x628   : > { %2198 = vmatpush3.bf16.msra.mxu0 %v2324_v24 }
 0x6ed   : > { %v1517_v52 = vpop.f32.mrb[12].mxu0 }
 0x6ee   : > { %v2181_v53 = vpop.f32.mrb[13].mxu0 }
 0x6ef   : > { %v1520_v54 = vpop.f32.mrb[14].mxu0 }
 0x6f0   : > { %v2182_v55 = vpop.f32.mrb[15].mxu0 }
 0x6f5   : > { %v1429_v56 = vpop.f32.mrb[16].mxu1 }
 0x6f6   : > { %v1518_v57 = vadd.f32 %v1517_v52, %v1429_v56  ;;  %v2161_v59 = vpop.f32.mrb[17].mxu1 }
 0x6f7   : > { %v1432_v60 = vpop.f32.mrb[18].mxu1 }
 0x6f8   : > { %v1523_v61 = vadd.f32 %v1518_v57, %v2613_v43  ;;  %v2162_v62 = vpop.f32.mrb[19].mxu1 }
 0x6f9   : > { %v2388_v62 = vmov (!%p2022_p8), 0.0  }
 0x6fa   : > { %v1528_v63 = vadd.f32 %v1527_v58, %v1523_v61  ;;  %v2339_v61 = vld [vmem:[%s2802_s11] sm:$0xff] (!%p2022_p8)   ;;  %2203 = vmatprep.subr.bf16.mxu0 (!%p2022_p8), %v2388_v62 }
 0x6fc   : > { %v1529_v3 = vsel %vm853_vm2, %v1528_v63, 0.0 }
 0x6fd   : > { %1530 = vadd.xlane.f32.xlu0 %v1529_v3 }
 0x78a   : > { %v1531_v4 = vpop.xlane.xlu0 %1530 }
 0x78b   : > { %v1532_v5 = vmul.f32 0.03125, %v1531_v4 }
 0x78d   : > { %v1533_v6 = vsub.f32 %v1528_v63, %v1532_v5 }
 0x78f   : > { %v1534_v7 = vmul.f32 %v1533_v6, %v1533_v6 }
 0x791   : > { %v1535_v8 = vsel %vm853_vm2, %v1534_v7, 0.0  ;;  %v1722_v7 = vld [vmem:[%s2820_s21] sm:$0x1] (!%p2022_p8) }
 0x792   : > { %1536 = vadd.xlane.f32.xlu1 %v1535_v8 }
 0x81f   : > { %v1537_v43 = vpop.xlane.xlu1 %1536 }
 0x820   : > { %v1538_v10 = vmul.f32 0.03125, %v1537_v43 }
 0x822   : > { %v1539_v11 = vadd.f32 1e-12, %v1538_v10 }
 0x824   : > { %2335 = vrsqrt.f32 %v1539_v11  ;;  %v1744_v11 = vld [vmem:[%s2822_s0] sm:$0x1] (!%p2022_p8) }
 0x82e   : > { %v2336_v13 = vpop.eup %2335 }
 0x82f   : > { %v1541_v17 = vmul.f32 %v2336_v13, %v1533_v6 }
 0x831   : > { %v1546_v18 = vmul.f32 %v1545_v12, %v1541_v17 }
 0x833   : > { %v1551_v19 = vadd.f32 %v1550_v15, %v1546_v18 }
 0x835   : > { %v1552_v20 = vpack.c.bf16 %v1551_v19, %v1551_v19 }
 0x837   : > { %2188 = vmatmul.mubr.msk.bf16.vlgmr.msra.gmra.mrb[20].mxu1 %vm853_vm2, %v1552_v20 }
 0x90a   : > { %v1610_v25 = vpop.f32.mrb[20].mxu1 }
 0x90b   : > { %v1611_v27 = vadd.f32 %v1610_v25, %v1560_v21  ;;  %v2189_v28 = vpop.f32.mrb[21].mxu1 }
 0x90c   : > { %v1613_v29 = vpop.f32.mrb[22].mxu1 }
 0x90d   : > { %v1616_v30 = vmul.f32 %v1611_v27, %v1611_v27  ;;  %v2190_v31 = vpop.f32.mrb[23].mxu1 }
 0x90f   : > { %v1617_v32 = vmul.f32 %v1616_v30, %v1611_v27 }
 0x911   : > { %v1618_v33 = vmul.f32 0.044715, %v1617_v32 }
 0x913   : > { %v1619_v34 = vadd.f32 %v1618_v33, %v1611_v27 }
 0x915   : > { %v1620_v35 = vmul.f32 0.7978846, %v1619_v34 }
 0x917   : > { %2337 = vtanh.f32 %v1620_v35 }
 0x921   : > { %v2338_v36 = vpop.eup %2337 }
 0x922   : > { %v1622_v37 = vadd.f32 1.0, %v2338_v36 }
 0x924   : > { %v1623_v14 = vmul.f32 0.5, %v1622_v37 }
 0x926   : > { %v1624_v39 = vmul.f32 %v1623_v14, %v1611_v27 }
 0x928   : > { %v1625_v40 = vpack.c.bf16 %v1624_v39, %v1624_v39 }
 0x92a   : > { %2200 = vmatmul.mubr.msk.bf16.vlgmr.msra.gmra.mrb[16].mxu0 %vm1658_vm6, %v1625_v40 }
 0x92b   : > { %2207 = vmatprep.mubr.msk.bf16.mxu0 (!%p2022_p8), %vm2389_vm7, %v2388_v62  ;;  %2204 = vmatpush3.bf16.msra.mxu0 (!%p2022_p8), %v2339_v61 }
 0x92c   : > { %2205 = vmatprep.subr.bf16.mxu0 (!%p2022_p8), %v2388_v62 }
 0x9fc   : > { %1712 = sbr.rel (%p2022_p8) target bundleno = 3109 (0xc25), region = 80 }
 0x9fd   : > { %v1696_v42 = vpop.f32.mrb[16].mxu0 }
 0x9fe   : > { %v1702_v44 = vadd.f32 %v1696_v42, %v1528_v63  ;;  %v2201_v45 = vpop.f32.mrb[17].mxu0  ;;  %v2340_v63 = vld [vmem:[%s2802_s11 + $0x8] sm:$0xff] (!%p2022_p8)  }
 0x9ff   : > { %v1699_v46 = vpop.f32.mrb[18].mxu0  ;;  %2206 = vmatpush3.bf16.msra.mxu0 (!%p2022_p8), %v2340_v63 }
 0xa00   : > { %v1707_v47 = vadd.f32 %v1706_v41, %v1702_v44  ;;  %v2202_v48 = vpop.f32.mrb[19].mxu0 }
 0xa02   : > { %1708 = vst.msk [vmem:[#allocation2] sm:$0xff] %vm853_vm2, %v1707_v47  ;;  %v1713_v49 = vsel (!%p2022_p8), %vm853_vm2, %v1707_v47, 0.0 }
 0xa03   : > { %v1714_v50 = vrot.slane %v1713_v49, 4 }
 0xa05   : > { %v1715_v51 = vadd.f32 %v1714_v50, %v1713_v49 }
 0xa07   : > { %v1716_v52 = vrot.slane %v1715_v51, 2 }
 0xa09   : > { %v1717_v53 = vadd.f32 %v1716_v52, %v1715_v51 }
 0xa0b   : > { %v1718_v0 = vrot.slane %v1717_v53, 1 }
 0xa0d   : > { %v1719_v54 = vadd.f32 %v1718_v0, %v1717_v53 }
 0xa0f   : > { %v1721_v2 = vmul.f32 0.125, %v1719_v54 }
 0xa11   : > { %v1724_v55 = vsel %vm853_vm2, %v1721_v2, 0.0 }
 0xa12   : > { %1725 = vadd.xlane.f32.xlu0 %v1724_v55 }
 0xa9f   : > { %v1726_v56 = vpop.xlane.xlu0 %1725 }
 0xaa0   : > { %v1727_v57 = vmul.f32 0.03125, %v1726_v56 }
 0xaa2   : > { %v1728_v58 = vsub.f32 %v1721_v2, %v1727_v57 }
 0xaa4   : > { %v1729_v59 = vmul.f32 %v1728_v58, %v1728_v58 }
 0xaa6   : > { %v1730_v60 = vsel %vm853_vm2, %v1729_v59, 0.0 }
 0xaa7   : > { %1731 = vadd.xlane.f32.xlu0 %v1730_v60 }
 0xb34   : > { %v1732_v3 = vpop.xlane.xlu0 %1731 }
 0xb35   : > { %v1733_v4 = vmul.f32 0.03125, %v1732_v3 }
 0xb37   : > { %v1734_v5 = vadd.f32 1e-12, %v1733_v4 }
 0xb39   : > { %2341 = vrsqrt.f32 %v1734_v5 }
 0xb43   : > { %v2342_v6 = vpop.eup %2341 }
 0xb44   : > { %v1736_v8 = vmul.f32 %v2342_v6, %v1728_v58 }
 0xb46   : > { %v1737_v26 = vmul.f32 %v1736_v8, %v1722_v7 }
 0xb48   : > { %v1738_v43 = vadd.f32 %v1737_v26, %v1723_v9 }
 0xb4a   : > { %v1739_v10 = vpack.c.bf16 %v1738_v43, %v1738_v43 }
 0xb4c   : > { %2208 = vmatmul.mubr.msk.bf16.vlgmr.msra.gmra.mrb[0].mxu0 %vm853_vm2, %v1739_v10 }
 0xc1f   : > { %v1794_v12 = vpop.f32.mrb[0].mxu0 }
 0xc20   : > { %v1795_v13 = vadd.f32 %v1794_v12, %v1744_v11  ;;  %v2209_v15 = vpop.f32.mrb[1].mxu0 }
 0xc21   : > { %v1797_v17 = vpop.f32.mrb[2].mxu0 }
 0xc22   : > { %v1803_v18 = vrot.slane %v1795_v13, %v2631_v1  ;;  %v2210_v19 = vpop.f32.mrb[3].mxu0 }
 0xc24   : > { %1804 = vst [vmem:[%s2532_s26] sm:$0xff] %v1803_v18 }
 0xc25 PF: > { %s2823_s16 = sld [smem:[#allocation5_spill]]  ;;  %s2824_s25 = sld [smem:[#allocation3_spill]] }
 0xc26   : > { %s2825_s26 = sld [smem:[#allocation4_spill]]  ;;  %s2826_s27 = sld [smem:[#allocation6_spill]] }
 0xc27   : > { %s2827_s28 = sld [smem:[#allocation7_spill]] }
 0xc2b   : > { %s23_s29 = sadd.s32 1, %s2823_s16  }
 0xc2c   : > { %p20_p9 = scmp.ge.s32.totalorder %s23_s29, 6  }
 0xc2e   :  { %22 = sbr.rel (!%p20_p9) target bundleno = 6 (0x6), region = 128 }

</bundles_post_ra>
